<compile_context>
chip_gen: v7x
topology: tpu7x:2x2x1
jax: 0.10.0
libtpu: 0.0.40
codegen_flags: <defaults>
</compile_context>

<pallas_src>
import jax
import jax.numpy as jnp
from jax import lax
from jax.experimental import pallas as pl
from jax.experimental.pallas import tpu as pltpu

# ----------------------- model hyper-parameters (small) -----------------------
NUM_ACTION = 4
FSTACK = 4            # stored by the torch module but unused in forward
EMB_SIZE = 32
RNN_SIZE = 32
HID = 128             # emb_fc output size (hard-coded 128 in the torch module)
UNROLL = 8
BATCH = 2
TB = UNROLL * BATCH
IN_DIM = EMB_SIZE + NUM_ACTION


# ------------------------------- Pallas kernel --------------------------------
def predictor_kernel(
    z_ref,        # (TB, EMB)        float32   latent z, flattened over time*batch
    act_ref,      # (TB, 1)          int32     action ids
    mask_ref,     # (TB, 1)          float32   1 - done
    w_emb_z_ref,  # (EMB, HID)                 emb_fc weight rows for z
    w_emb_a_ref,  # (NUM_ACTION, HID)          emb_fc weight rows for the one-hot action
    b_emb_ref,    # (1, HID)
    w_i_ref,      # (HID, 3*RNN)               fused [W_ir | W_iz | W_in]
    b_i_ref,      # (1, 3*RNN)                 fused [b_r  | b_z  | b_in]  (b_r/b_z = ih+hh folded)
    w_h_ref,      # (RNN, 3*RNN)               fused [W_hr | W_hz | W_hn]
    b_h_ref,      # (1, 3*RNN)                 fused [ 0   |  0   | b_hn]
    w_fc1_ref,    # (RNN, RNN)
    b_fc1_ref,    # (1, RNN)
    w_fc2_ref,    # (RNN, EMB)
    b_fc2_ref,    # (1, EMB)
    zpred_ref,    # out: (TB, EMB)
    hx_out_ref,   # out: (B, RNN)    final hidden state
    h_scr,        # scratch: (TB, RNN)  hidden states over all steps
):
    R = RNN_SIZE

    # ---- one-hot(action) built in-kernel (replaces wrapper one_hot + concat) ----
    act = act_ref[...]                                            # (TB, 1) int32
    oh = (lax.broadcasted_iota(jnp.int32, (TB, NUM_ACTION), 1) == act).astype(jnp.float32)

    # ---- emb_fc, batched over all T*B rows (no dependence on hx) ----
    emb = (
        jnp.dot(z_ref[...], w_emb_z_ref[...], preferred_element_type=jnp.float32)
        + jnp.dot(oh, w_emb_a_ref[...], preferred_element_type=jnp.float32)
        + b_emb_ref[...]
    )                                                             # (TB, HID)

    # ---- input-side gate projections for all steps, single fused matmul ----
    gi = jnp.dot(emb, w_i_ref[...], preferred_element_type=jnp.float32) + b_i_ref[...]   # (TB, 3R)

    mask = mask_ref[...]                                          # (TB, 1)
    w_h = w_h_ref[...]                                            # (R, 3R)
    b_h = b_h_ref[...]                                            # (1, 3R)

    # ---- GRU recurrence: only the hidden-path matmul stays on the serial path ----
    h = jnp.zeros((BATCH, R), jnp.float32)                        # hx=None -> zeros
    for i in range(UNROLL):                                       # fully unrolled, static indices
        lo = i * BATCH
        hi = lo + BATCH
        h_prev = h * mask[lo:hi, :]                               # done-masking (no-op at step 0)
        gh = jnp.dot(h_prev, w_h, preferred_element_type=jnp.float32) + b_h   # (B, 3R)
        gi_t = gi[lo:hi, :]                                       # (B, 3R)
        r = jax.nn.sigmoid(gi_t[:, :R] + gh[:, :R])
        zg = jax.nn.sigmoid(gi_t[:, R:2 * R] + gh[:, R:2 * R])
        n = jnp.tanh(gi_t[:, 2 * R:] + r * gh[:, 2 * R:])         # b_in in gi, b_hn inside r*(.)
        h = (1.0 - zg) * n + zg * h_prev
        h_scr[lo:hi, :] = h

    hx_out_ref[...] = h                                           # written exactly once

    # ---- fc head (Linear -> ReLU -> Linear), batched over T*B, single output store ----
    hcat = h_scr[...]                                             # (TB, R)
    f1 = jnp.maximum(
        jnp.dot(hcat, w_fc1_ref[...], preferred_element_type=jnp.float32) + b_fc1_ref[...],
        0.0,
    )
    zpred_ref[...] = (
        jnp.dot(f1, w_fc2_ref[...], preferred_element_type=jnp.float32) + b_fc2_ref[...]
    )


# --------------------------------- wrapper ------------------------------------
def _full_spec(shape):
    nd = len(shape)
    return pl.BlockSpec(shape, lambda i, _nd=nd: (0,) * _nd)


@jax.jit
def predictor_forward(z, action, done, params):
    unroll, batch, emb_size = z.shape
    tb = unroll * batch

    # Cheap layout plumbing only (bitcast reshapes); all math happens in the kernel.
    z_flat = z.reshape(tb, emb_size).astype(jnp.float32)
    act_flat = action[:, :, 0].reshape(tb, 1).astype(jnp.int32)
    mask_flat = (1.0 - done.astype(jnp.float32)).reshape(tb, 1)

    p = params
    w_emb_z = p["w_emb"][:EMB_SIZE, :]
    w_emb_a = p["w_emb"][EMB_SIZE:, :]
    w_i = jnp.concatenate([p["w_ir"], p["w_iz"], p["w_in"]], axis=1)     # (HID, 3R)
    b_i = jnp.concatenate([p["b_r"], p["b_z"], p["b_in"]], axis=1)       # (1, 3R)
    w_h = jnp.concatenate([p["w_hr"], p["w_hz"], p["w_hn"]], axis=1)     # (RNN, 3R)
    zr = jnp.zeros((1, RNN_SIZE), jnp.float32)
    b_h = jnp.concatenate([zr, zr, p["b_hn"]], axis=1)                   # (1, 3R)

    args = (
        z_flat, act_flat, mask_flat,
        w_emb_z, w_emb_a, p["b_emb"],
        w_i, b_i, w_h, b_h,
        p["w_fc1"], p["b_fc1"], p["w_fc2"], p["b_fc2"],
    )

    z_pred_flat, hx = pl.pallas_call(
        predictor_kernel,
        out_shape=(
            jax.ShapeDtypeStruct((tb, emb_size), jnp.float32),
            jax.ShapeDtypeStruct((batch, RNN_SIZE), jnp.float32),
        ),
        grid_spec=pltpu.PrefetchScalarGridSpec(
            num_scalar_prefetch=0,
            grid=(1,),                                # whole problem in one invocation (<1 MiB VMEM)
            in_specs=[_full_spec(a.shape) for a in args],
            out_specs=[
                _full_spec((tb, emb_size)),
                _full_spec((batch, RNN_SIZE)),
            ],
            scratch_shapes=[pltpu.VMEM((tb, RNN_SIZE), jnp.float32)],
        ),
        compiler_params=pltpu.CompilerParams(
            dimension_semantics=("arbitrary",),
        ),
    )(*args)

    return z_pred_flat.reshape(unroll, batch, emb_size), hx


# ------------------------------ pure-JAX reference -----------------------------
def reference_forward(z, action, done, p):
    unroll, batch, emb_size = z.shape
    a = jax.nn.one_hot(action[:, :, 0], NUM_ACTION, dtype=jnp.float32)
    x = jnp.concatenate([z, a], axis=2).reshape(unroll * batch, IN_DIM)
    e = (x @ p["w_emb"] + p["b_emb"]).reshape(unroll, batch, HID)
    mask = 1.0 - done.astype(jnp.float32)
    hx = jnp.zeros((batch, RNN_SIZE), jnp.float32)
    hs = []
    for i in range(unroll):
        h_prev = hx * mask[i]
        gi_r = e[i] @ p["w_ir"]
        gi_z = e[i] @ p["w_iz"]
        gi_n = e[i] @ p["w_in"] + p["b_in"]
        gh_r = h_prev @ p["w_hr"]
        gh_z = h_prev @ p["w_hz"]
        gh_n = h_prev @ p["w_hn"] + p["b_hn"]
        r = jax.nn.sigmoid(gi_r + gh_r + p["b_r"])
        zg = jax.nn.sigmoid(gi_z + gh_z + p["b_z"])
        n = jnp.tanh(gi_n + r * gh_n)
        hx = (1.0 - zg) * n + zg * h_prev
        hs.append(hx)
    h = jnp.stack(hs).reshape(unroll * batch, RNN_SIZE)
    f1 = jnp.maximum(h @ p["w_fc1"] + p["b_fc1"], 0.0)
    z_pred = (f1 @ p["w_fc2"] + p["b_fc2"]).reshape(unroll, batch, emb_size)
    return z_pred, hx


# --------------------------------- main ----------------------------------------
def make_params(key):
    def dense(k, shape, scale=0.1):
        return (scale * jax.random.normal(k, shape)).astype(jnp.float32)

    ks = jax.random.split(key, 16)
    return {
        "w_emb": dense(ks[0], (IN_DIM, HID)),
        "b_emb": dense(ks[1], (1, HID)),
        "w_ir": dense(ks[2], (HID, RNN_SIZE)),
        "w_iz": dense(ks[3], (HID, RNN_SIZE)),
        "w_in": dense(ks[4], (HID, RNN_SIZE)),
        "w_hr": dense(ks[5], (RNN_SIZE, RNN_SIZE)),
        "w_hz": dense(ks[6], (RNN_SIZE, RNN_SIZE)),
        "w_hn": dense(ks[7], (RNN_SIZE, RNN_SIZE)),
        "b_r": dense(ks[8], (1, RNN_SIZE)),     # b_ir + b_hr folded
        "b_z": dense(ks[9], (1, RNN_SIZE)),     # b_iz + b_hz folded
        "b_in": dense(ks[10], (1, RNN_SIZE)),
        "b_hn": dense(ks[11], (1, RNN_SIZE)),
        "w_fc1": dense(ks[12], (RNN_SIZE, RNN_SIZE)),
        "b_fc1": dense(ks[13], (1, RNN_SIZE)),
        "w_fc2": dense(ks[14], (RNN_SIZE, EMB_SIZE)),
        "b_fc2": dense(ks[15], (1, EMB_SIZE)),
    }


if __name__ == "__main__":
    key = jax.random.PRNGKey(0)
    k_p, k_z, k_a, k_d = jax.random.split(key, 4)

    params = make_params(k_p)
    z = jax.random.normal(k_z, (UNROLL, BATCH, EMB_SIZE), dtype=jnp.float32)
    action = jax.random.randint(k_a, (UNROLL, BATCH, 1), 0, NUM_ACTION, dtype=jnp.int32)
    done = (jax.random.uniform(k_d, (UNROLL, BATCH, 1)) < 0.2).astype(jnp.float32)

    z_pred, hx = predictor_forward(z, action, done, params)
    jax.block_until_ready((z_pred, hx))

    z_ref, hx_ref = reference_forward(z, action, done, params)
    assert z_pred.shape == (UNROLL, BATCH, EMB_SIZE)
    assert hx.shape == (BATCH, RNN_SIZE)
    assert jnp.allclose(z_pred, z_ref, rtol=1e-4, atol=1e-4)
    assert jnp.allclose(hx, hx_ref, rtol=1e-4, atol=1e-4)

    print("KERNEL_OK")
</pallas_src>

<mosaic_0001>
module attributes {stable_mosaic.version = 11 : i64} {
  func.func @predictor_kernel(%arg0: i32, %arg1: memref<16x32xf32, #tpu.memory_space<vmem>>, %arg2: memref<16x1xi32, #tpu.memory_space<vmem>>, %arg3: memref<16x1xf32, #tpu.memory_space<vmem>>, %arg4: memref<32x128xf32, #tpu.memory_space<vmem>>, %arg5: memref<4x128xf32, #tpu.memory_space<vmem>>, %arg6: memref<1x128xf32, #tpu.memory_space<vmem>>, %arg7: memref<128x96xf32, #tpu.memory_space<vmem>>, %arg8: memref<1x96xf32, #tpu.memory_space<vmem>>, %arg9: memref<32x96xf32, #tpu.memory_space<vmem>>, %arg10: memref<1x96xf32, #tpu.memory_space<vmem>>, %arg11: memref<32x32xf32, #tpu.memory_space<vmem>>, %arg12: memref<1x32xf32, #tpu.memory_space<vmem>>, %arg13: memref<32x32xf32, #tpu.memory_space<vmem>>, %arg14: memref<1x32xf32, #tpu.memory_space<vmem>>, %arg15: memref<16x32xf32, #tpu.memory_space<vmem>>, %arg16: memref<2x32xf32, #tpu.memory_space<vmem>>, %arg17: memref<16x32xf32, #tpu.memory_space<vmem>>) attributes {dimension_semantics = [#tpu.dimension_semantics<arbitrary>], iteration_bounds = array<i64: 1>, scalar_prefetch = 0 : i64, scratch_operands = 1 : i64, tpu.core_type = #tpu.core_type<tc>, window_params = [{pipeline_mode = #tpu.pipeline_mode<synchronous>, transform_indices = @transform_0, window_bounds = array<i64: 16, 32>}, {pipeline_mode = #tpu.pipeline_mode<synchronous>, transform_indices = @transform_1, window_bounds = array<i64: 16, 1>}, {pipeline_mode = #tpu.pipeline_mode<synchronous>, transform_indices = @transform_2, window_bounds = array<i64: 16, 1>}, {pipeline_mode = #tpu.pipeline_mode<synchronous>, transform_indices = @transform_3, window_bounds = array<i64: 32, 128>}, {pipeline_mode = #tpu.pipeline_mode<synchronous>, transform_indices = @transform_4, window_bounds = array<i64: 4, 128>}, {pipeline_mode = #tpu.pipeline_mode<synchronous>, transform_indices = @transform_5, window_bounds = array<i64: 1, 128>}, {pipeline_mode = #tpu.pipeline_mode<synchronous>, transform_indices = @transform_6, window_bounds = array<i64: 128, 96>}, {pipeline_mode = #tpu.pipeline_mode<synchronous>, transform_indices = @transform_7, window_bounds = array<i64: 1, 96>}, {pipeline_mode = #tpu.pipeline_mode<synchronous>, transform_indices = @transform_8, window_bounds = array<i64: 32, 96>}, {pipeline_mode = #tpu.pipeline_mode<synchronous>, transform_indices = @transform_9, window_bounds = array<i64: 1, 96>}, {pipeline_mode = #tpu.pipeline_mode<synchronous>, transform_indices = @transform_10, window_bounds = array<i64: 32, 32>}, {pipeline_mode = #tpu.pipeline_mode<synchronous>, transform_indices = @transform_11, window_bounds = array<i64: 1, 32>}, {pipeline_mode = #tpu.pipeline_mode<synchronous>, transform_indices = @transform_12, window_bounds = array<i64: 32, 32>}, {pipeline_mode = #tpu.pipeline_mode<synchronous>, transform_indices = @transform_13, window_bounds = array<i64: 1, 32>}, {pipeline_mode = #tpu.pipeline_mode<synchronous>, transform_indices = @transform_14, window_bounds = array<i64: 16, 32>}, {pipeline_mode = #tpu.pipeline_mode<synchronous>, transform_indices = @transform_15, window_bounds = array<i64: 2, 32>}]} {
    %c0 = arith.constant 0 : index
    %c0_0 = arith.constant 0 : index
    %0 = vector.load %arg2[%c0, %c0_0] : memref<16x1xi32, #tpu.memory_space<vmem>>, vector<16x1xi32>
    %1 = tpu.iota {dimensions = array<i32: 1>} : vector<16x4xi32>
    %2 = vector.broadcast %0 : vector<16x1xi32> to vector<16x4xi32>
    %3 = arith.cmpi eq, %1, %2 : vector<16x4xi32>
    %4 = arith.extui %3 : vector<16x4xi1> to vector<16x4xi32>
    %5 = arith.sitofp %4 : vector<16x4xi32> to vector<16x4xf32>
    %c0_1 = arith.constant 0 : index
    %c0_2 = arith.constant 0 : index
    %6 = vector.load %arg1[%c0_1, %c0_2] : memref<16x32xf32, #tpu.memory_space<vmem>>, vector<16x32xf32>
    %c0_3 = arith.constant 0 : index
    %c0_4 = arith.constant 0 : index
    %7 = vector.load %arg4[%c0_3, %c0_4] : memref<32x128xf32, #tpu.memory_space<vmem>>, vector<32x128xf32>
    %cst = arith.constant dense<0.000000e+00> : vector<16x128xf32>
    %8 = tpu.matmul %6, %7, %cst {dimension_numbers = #tpu.dot_dimension_numbers<[1], [0], [0], [1], [0, 0, 1, 1], [], []>} : vector<16x32xf32>, vector<32x128xf32>, vector<16x128xf32> -> vector<16x128xf32>
    %c0_5 = arith.constant 0 : index
    %c0_6 = arith.constant 0 : index
    %9 = vector.load %arg5[%c0_5, %c0_6] : memref<4x128xf32, #tpu.memory_space<vmem>>, vector<4x128xf32>
    %cst_7 = arith.constant dense<0.000000e+00> : vector<16x128xf32>
    %10 = tpu.matmul %5, %9, %cst_7 {dimension_numbers = #tpu.dot_dimension_numbers<[1], [0], [0], [1], [0, 0, 1, 1], [], []>} : vector<16x4xf32>, vector<4x128xf32>, vector<16x128xf32> -> vector<16x128xf32>
    %11 = arith.addf %8, %10 : vector<16x128xf32>
    %c0_8 = arith.constant 0 : index
    %c0_9 = arith.constant 0 : index
    %12 = vector.load %arg6[%c0_8, %c0_9] : memref<1x128xf32, #tpu.memory_space<vmem>>, vector<1x128xf32>
    %13 = vector.broadcast %12 : vector<1x128xf32> to vector<16x128xf32>
    %14 = arith.addf %11, %13 : vector<16x128xf32>
    %c0_10 = arith.constant 0 : index
    %c0_11 = arith.constant 0 : index
    %15 = vector.load %arg7[%c0_10, %c0_11] : memref<128x96xf32, #tpu.memory_space<vmem>>, vector<128x96xf32>
    %cst_12 = arith.constant dense<0.000000e+00> : vector<16x96xf32>
    %16 = tpu.matmul %14, %15, %cst_12 {dimension_numbers = #tpu.dot_dimension_numbers<[1], [0], [0], [1], [0, 0, 1, 1], [], []>} : vector<16x128xf32>, vector<128x96xf32>, vector<16x96xf32> -> vector<16x96xf32>
    %c0_13 = arith.constant 0 : index
    %c0_14 = arith.constant 0 : index
    %17 = vector.load %arg8[%c0_13, %c0_14] : memref<1x96xf32, #tpu.memory_space<vmem>>, vector<1x96xf32>
    %18 = vector.broadcast %17 : vector<1x96xf32> to vector<16x96xf32>
    %19 = arith.addf %16, %18 : vector<16x96xf32>
    %c0_15 = arith.constant 0 : index
    %c0_16 = arith.constant 0 : index
    %20 = vector.load %arg3[%c0_15, %c0_16] : memref<16x1xf32, #tpu.memory_space<vmem>>, vector<16x1xf32>
    %c0_17 = arith.constant 0 : index
    %c0_18 = arith.constant 0 : index
    %21 = vector.load %arg9[%c0_17, %c0_18] : memref<32x96xf32, #tpu.memory_space<vmem>>, vector<32x96xf32>
    %c0_19 = arith.constant 0 : index
    %c0_20 = arith.constant 0 : index
    %22 = vector.load %arg10[%c0_19, %c0_20] : memref<1x96xf32, #tpu.memory_space<vmem>>, vector<1x96xf32>
    %cst_21 = arith.constant 0.000000e+00 : f32
    %23 = vector.broadcast %cst_21 : f32 to vector<2x32xf32>
    %24 = vector.extract_strided_slice %20 {offsets = [0, 0], sizes = [2, 1], strides = [1, 1]} : vector<16x1xf32> to vector<2x1xf32>
    %25 = vector.broadcast %24 : vector<2x1xf32> to vector<2x32xf32>
    %26 = arith.mulf %23, %25 : vector<2x32xf32>
    %cst_22 = arith.constant dense<0.000000e+00> : vector<2x96xf32>
    %27 = tpu.matmul %26, %21, %cst_22 {dimension_numbers = #tpu.dot_dimension_numbers<[1], [0], [0], [1], [0, 0, 1, 1], [], []>} : vector<2x32xf32>, vector<32x96xf32>, vector<2x96xf32> -> vector<2x96xf32>
    %28 = vector.broadcast %22 : vector<1x96xf32> to vector<2x96xf32>
    %29 = arith.addf %27, %28 : vector<2x96xf32>
    %30 = vector.extract_strided_slice %19 {offsets = [0, 0], sizes = [2, 96], strides = [1, 1]} : vector<16x96xf32> to vector<2x96xf32>
    %31 = vector.extract_strided_slice %30 {offsets = [0, 0], sizes = [2, 32], strides = [1, 1]} : vector<2x96xf32> to vector<2x32xf32>
    %32 = vector.extract_strided_slice %29 {offsets = [0, 0], sizes = [2, 32], strides = [1, 1]} : vector<2x96xf32> to vector<2x32xf32>
    %33 = arith.addf %31, %32 : vector<2x32xf32>
    %34 = arith.negf %33 : vector<2x32xf32>
    %35 = math.exp %34 : vector<2x32xf32>
    %cst_23 = arith.constant 1.000000e+00 : f32
    %36 = vector.broadcast %cst_23 : f32 to vector<2x32xf32>
    %37 = arith.addf %36, %35 : vector<2x32xf32>
    %38 = arith.divf %36, %37 : vector<2x32xf32>
    %39 = vector.extract_strided_slice %30 {offsets = [0, 32], sizes = [2, 32], strides = [1, 1]} : vector<2x96xf32> to vector<2x32xf32>
    %40 = vector.extract_strided_slice %29 {offsets = [0, 32], sizes = [2, 32], strides = [1, 1]} : vector<2x96xf32> to vector<2x32xf32>
    %41 = arith.addf %39, %40 : vector<2x32xf32>
    %42 = arith.negf %41 : vector<2x32xf32>
    %43 = math.exp %42 : vector<2x32xf32>
    %cst_24 = arith.constant 1.000000e+00 : f32
    %44 = vector.broadcast %cst_24 : f32 to vector<2x32xf32>
    %45 = arith.addf %44, %43 : vector<2x32xf32>
    %46 = arith.divf %44, %45 : vector<2x32xf32>
    %47 = vector.extract_strided_slice %30 {offsets = [0, 64], sizes = [2, 32], strides = [1, 1]} : vector<2x96xf32> to vector<2x32xf32>
    %48 = vector.extract_strided_slice %29 {offsets = [0, 64], sizes = [2, 32], strides = [1, 1]} : vector<2x96xf32> to vector<2x32xf32>
    %49 = arith.mulf %38, %48 : vector<2x32xf32>
    %50 = arith.addf %47, %49 : vector<2x32xf32>
    %51 = math.tanh %50 : vector<2x32xf32>
    %cst_25 = arith.constant 1.000000e+00 : f32
    %52 = vector.broadcast %cst_25 : f32 to vector<2x32xf32>
    %53 = arith.subf %52, %46 : vector<2x32xf32>
    %54 = arith.mulf %53, %51 : vector<2x32xf32>
    %55 = arith.mulf %46, %26 : vector<2x32xf32>
    %56 = arith.addf %54, %55 : vector<2x32xf32>
    %c0_26 = arith.constant 0 : index
    %c0_27 = arith.constant 0 : index
    %57 = vector.load %arg17[%c0_26, %c0_27] : memref<16x32xf32, #tpu.memory_space<vmem>>, vector<2x32xf32>
    tpu.vector_store %arg17[%c0_26, %c0_27], %56 {strides = array<i32>} : memref<16x32xf32, #tpu.memory_space<vmem>>, vector<2x32xf32>,
    %58 = vector.extract_strided_slice %20 {offsets = [2, 0], sizes = [2, 1], strides = [1, 1]} : vector<16x1xf32> to vector<2x1xf32>
    %59 = vector.broadcast %58 : vector<2x1xf32> to vector<2x32xf32>
    %60 = arith.mulf %56, %59 : vector<2x32xf32>
    %cst_28 = arith.constant dense<0.000000e+00> : vector<2x96xf32>
    %61 = tpu.matmul %60, %21, %cst_28 {dimension_numbers = #tpu.dot_dimension_numbers<[1], [0], [0], [1], [0, 0, 1, 1], [], []>} : vector<2x32xf32>, vector<32x96xf32>, vector<2x96xf32> -> vector<2x96xf32>
    %62 = vector.broadcast %22 : vector<1x96xf32> to vector<2x96xf32>
    %63 = arith.addf %61, %62 : vector<2x96xf32>
    %64 = vector.extract_strided_slice %19 {offsets = [2, 0], sizes = [2, 96], strides = [1, 1]} : vector<16x96xf32> to vector<2x96xf32>
    %65 = vector.extract_strided_slice %64 {offsets = [0, 0], sizes = [2, 32], strides = [1, 1]} : vector<2x96xf32> to vector<2x32xf32>
    %66 = vector.extract_strided_slice %63 {offsets = [0, 0], sizes = [2, 32], strides = [1, 1]} : vector<2x96xf32> to vector<2x32xf32>
    %67 = arith.addf %65, %66 : vector<2x32xf32>
    %68 = arith.negf %67 : vector<2x32xf32>
    %69 = math.exp %68 : vector<2x32xf32>
    %cst_29 = arith.constant 1.000000e+00 : f32
    %70 = vector.broadcast %cst_29 : f32 to vector<2x32xf32>
    %71 = arith.addf %70, %69 : vector<2x32xf32>
    %72 = arith.divf %70, %71 : vector<2x32xf32>
    %73 = vector.extract_strided_slice %64 {offsets = [0, 32], sizes = [2, 32], strides = [1, 1]} : vector<2x96xf32> to vector<2x32xf32>
    %74 = vector.extract_strided_slice %63 {offsets = [0, 32], sizes = [2, 32], strides = [1, 1]} : vector<2x96xf32> to vector<2x32xf32>
    %75 = arith.addf %73, %74 : vector<2x32xf32>
    %76 = arith.negf %75 : vector<2x32xf32>
    %77 = math.exp %76 : vector<2x32xf32>
    %cst_30 = arith.constant 1.000000e+00 : f32
    %78 = vector.broadcast %cst_30 : f32 to vector<2x32xf32>
    %79 = arith.addf %78, %77 : vector<2x32xf32>
    %80 = arith.divf %78, %79 : vector<2x32xf32>
    %81 = vector.extract_strided_slice %64 {offsets = [0, 64], sizes = [2, 32], strides = [1, 1]} : vector<2x96xf32> to vector<2x32xf32>
    %82 = vector.extract_strided_slice %63 {offsets = [0, 64], sizes = [2, 32], strides = [1, 1]} : vector<2x96xf32> to vector<2x32xf32>
    %83 = arith.mulf %72, %82 : vector<2x32xf32>
    %84 = arith.addf %81, %83 : vector<2x32xf32>
    %85 = math.tanh %84 : vector<2x32xf32>
    %cst_31 = arith.constant 1.000000e+00 : f32
    %86 = vector.broadcast %cst_31 : f32 to vector<2x32xf32>
    %87 = arith.subf %86, %80 : vector<2x32xf32>
    %88 = arith.mulf %87, %85 : vector<2x32xf32>
    %89 = arith.mulf %80, %60 : vector<2x32xf32>
    %90 = arith.addf %88, %89 : vector<2x32xf32>
    %c2 = arith.constant 2 : index
    %c0_32 = arith.constant 0 : index
    %91 = vector.load %arg17[%c2, %c0_32] : memref<16x32xf32, #tpu.memory_space<vmem>>, vector<2x32xf32>
    tpu.vector_store %arg17[%c2, %c0_32], %90 {strides = array<i32>} : memref<16x32xf32, #tpu.memory_space<vmem>>, vector<2x32xf32>,
    %92 = vector.extract_strided_slice %20 {offsets = [4, 0], sizes = [2, 1], strides = [1, 1]} : vector<16x1xf32> to vector<2x1xf32>
    %93 = vector.broadcast %92 : vector<2x1xf32> to vector<2x32xf32>
    %94 = arith.mulf %90, %93 : vector<2x32xf32>
    %cst_33 = arith.constant dense<0.000000e+00> : vector<2x96xf32>
    %95 = tpu.matmul %94, %21, %cst_33 {dimension_numbers = #tpu.dot_dimension_numbers<[1], [0], [0], [1], [0, 0, 1, 1], [], []>} : vector<2x32xf32>, vector<32x96xf32>, vector<2x96xf32> -> vector<2x96xf32>
    %96 = vector.broadcast %22 : vector<1x96xf32> to vector<2x96xf32>
    %97 = arith.addf %95, %96 : vector<2x96xf32>
    %98 = vector.extract_strided_slice %19 {offsets = [4, 0], sizes = [2, 96], strides = [1, 1]} : vector<16x96xf32> to vector<2x96xf32>
    %99 = vector.extract_strided_slice %98 {offsets = [0, 0], sizes = [2, 32], strides = [1, 1]} : vector<2x96xf32> to vector<2x32xf32>
    %100 = vector.extract_strided_slice %97 {offsets = [0, 0], sizes = [2, 32], strides = [1, 1]} : vector<2x96xf32> to vector<2x32xf32>
    %101 = arith.addf %99, %100 : vector<2x32xf32>
    %102 = arith.negf %101 : vector<2x32xf32>
    %103 = math.exp %102 : vector<2x32xf32>
    %cst_34 = arith.constant 1.000000e+00 : f32
    %104 = vector.broadcast %cst_34 : f32 to vector<2x32xf32>
    %105 = arith.addf %104, %103 : vector<2x32xf32>
    %106 = arith.divf %104, %105 : vector<2x32xf32>
    %107 = vector.extract_strided_slice %98 {offsets = [0, 32], sizes = [2, 32], strides = [1, 1]} : vector<2x96xf32> to vector<2x32xf32>
    %108 = vector.extract_strided_slice %97 {offsets = [0, 32], sizes = [2, 32], strides = [1, 1]} : vector<2x96xf32> to vector<2x32xf32>
    %109 = arith.addf %107, %108 : vector<2x32xf32>
    %110 = arith.negf %109 : vector<2x32xf32>
    %111 = math.exp %110 : vector<2x32xf32>
    %cst_35 = arith.constant 1.000000e+00 : f32
    %112 = vector.broadcast %cst_35 : f32 to vector<2x32xf32>
    %113 = arith.addf %112, %111 : vector<2x32xf32>
    %114 = arith.divf %112, %113 : vector<2x32xf32>
    %115 = vector.extract_strided_slice %98 {offsets = [0, 64], sizes = [2, 32], strides = [1, 1]} : vector<2x96xf32> to vector<2x32xf32>
    %116 = vector.extract_strided_slice %97 {offsets = [0, 64], sizes = [2, 32], strides = [1, 1]} : vector<2x96xf32> to vector<2x32xf32>
    %117 = arith.mulf %106, %116 : vector<2x32xf32>
    %118 = arith.addf %115, %117 : vector<2x32xf32>
    %119 = math.tanh %118 : vector<2x32xf32>
    %cst_36 = arith.constant 1.000000e+00 : f32
    %120 = vector.broadcast %cst_36 : f32 to vector<2x32xf32>
    %121 = arith.subf %120, %114 : vector<2x32xf32>
    %122 = arith.mulf %121, %119 : vector<2x32xf32>
    %123 = arith.mulf %114, %94 : vector<2x32xf32>
    %124 = arith.addf %122, %123 : vector<2x32xf32>
    %c4 = arith.constant 4 : index
    %c0_37 = arith.constant 0 : index
    %125 = vector.load %arg17[%c4, %c0_37] : memref<16x32xf32, #tpu.memory_space<vmem>>, vector<2x32xf32>
    tpu.vector_store %arg17[%c4, %c0_37], %124 {strides = array<i32>} : memref<16x32xf32, #tpu.memory_space<vmem>>, vector<2x32xf32>,
    %126 = vector.extract_strided_slice %20 {offsets = [6, 0], sizes = [2, 1], strides = [1, 1]} : vector<16x1xf32> to vector<2x1xf32>
    %127 = vector.broadcast %126 : vector<2x1xf32> to vector<2x32xf32>
    %128 = arith.mulf %124, %127 : vector<2x32xf32>
    %cst_38 = arith.constant dense<0.000000e+00> : vector<2x96xf32>
    %129 = tpu.matmul %128, %21, %cst_38 {dimension_numbers = #tpu.dot_dimension_numbers<[1], [0], [0], [1], [0, 0, 1, 1], [], []>} : vector<2x32xf32>, vector<32x96xf32>, vector<2x96xf32> -> vector<2x96xf32>
    %130 = vector.broadcast %22 : vector<1x96xf32> to vector<2x96xf32>
    %131 = arith.addf %129, %130 : vector<2x96xf32>
    %132 = vector.extract_strided_slice %19 {offsets = [6, 0], sizes = [2, 96], strides = [1, 1]} : vector<16x96xf32> to vector<2x96xf32>
    %133 = vector.extract_strided_slice %132 {offsets = [0, 0], sizes = [2, 32], strides = [1, 1]} : vector<2x96xf32> to vector<2x32xf32>
    %134 = vector.extract_strided_slice %131 {offsets = [0, 0], sizes = [2, 32], strides = [1, 1]} : vector<2x96xf32> to vector<2x32xf32>
    %135 = arith.addf %133, %134 : vector<2x32xf32>
    %136 = arith.negf %135 : vector<2x32xf32>
    %137 = math.exp %136 : vector<2x32xf32>
    %cst_39 = arith.constant 1.000000e+00 : f32
    %138 = vector.broadcast %cst_39 : f32 to vector<2x32xf32>
    %139 = arith.addf %138, %137 : vector<2x32xf32>
    %140 = arith.divf %138, %139 : vector<2x32xf32>
    %141 = vector.extract_strided_slice %132 {offsets = [0, 32], sizes = [2, 32], strides = [1, 1]} : vector<2x96xf32> to vector<2x32xf32>
    %142 = vector.extract_strided_slice %131 {offsets = [0, 32], sizes = [2, 32], strides = [1, 1]} : vector<2x96xf32> to vector<2x32xf32>
    %143 = arith.addf %141, %142 : vector<2x32xf32>
    %144 = arith.negf %143 : vector<2x32xf32>
    %145 = math.exp %144 : vector<2x32xf32>
    %cst_40 = arith.constant 1.000000e+00 : f32
    %146 = vector.broadcast %cst_40 : f32 to vector<2x32xf32>
    %147 = arith.addf %146, %145 : vector<2x32xf32>
    %148 = arith.divf %146, %147 : vector<2x32xf32>
    %149 = vector.extract_strided_slice %132 {offsets = [0, 64], sizes = [2, 32], strides = [1, 1]} : vector<2x96xf32> to vector<2x32xf32>
    %150 = vector.extract_strided_slice %131 {offsets = [0, 64], sizes = [2, 32], strides = [1, 1]} : vector<2x96xf32> to vector<2x32xf32>
    %151 = arith.mulf %140, %150 : vector<2x32xf32>
    %152 = arith.addf %149, %151 : vector<2x32xf32>
    %153 = math.tanh %152 : vector<2x32xf32>
    %cst_41 = arith.constant 1.000000e+00 : f32
    %154 = vector.broadcast %cst_41 : f32 to vector<2x32xf32>
    %155 = arith.subf %154, %148 : vector<2x32xf32>
    %156 = arith.mulf %155, %153 : vector<2x32xf32>
    %157 = arith.mulf %148, %128 : vector<2x32xf32>
    %158 = arith.addf %156, %157 : vector<2x32xf32>
    %c6 = arith.constant 6 : index
    %c0_42 = arith.constant 0 : index
    %159 = vector.load %arg17[%c6, %c0_42] : memref<16x32xf32, #tpu.memory_space<vmem>>, vector<2x32xf32>
    tpu.vector_store %arg17[%c6, %c0_42], %158 {strides = array<i32>} : memref<16x32xf32, #tpu.memory_space<vmem>>, vector<2x32xf32>,
    %160 = vector.extract_strided_slice %20 {offsets = [8, 0], sizes = [2, 1], strides = [1, 1]} : vector<16x1xf32> to vector<2x1xf32>
    %161 = vector.broadcast %160 : vector<2x1xf32> to vector<2x32xf32>
    %162 = arith.mulf %158, %161 : vector<2x32xf32>
    %cst_43 = arith.constant dense<0.000000e+00> : vector<2x96xf32>
    %163 = tpu.matmul %162, %21, %cst_43 {dimension_numbers = #tpu.dot_dimension_numbers<[1], [0], [0], [1], [0, 0, 1, 1], [], []>} : vector<2x32xf32>, vector<32x96xf32>, vector<2x96xf32> -> vector<2x96xf32>
    %164 = vector.broadcast %22 : vector<1x96xf32> to vector<2x96xf32>
    %165 = arith.addf %163, %164 : vector<2x96xf32>
    %166 = vector.extract_strided_slice %19 {offsets = [8, 0], sizes = [2, 96], strides = [1, 1]} : vector<16x96xf32> to vector<2x96xf32>
    %167 = vector.extract_strided_slice %166 {offsets = [0, 0], sizes = [2, 32], strides = [1, 1]} : vector<2x96xf32> to vector<2x32xf32>
    %168 = vector.extract_strided_slice %165 {offsets = [0, 0], sizes = [2, 32], strides = [1, 1]} : vector<2x96xf32> to vector<2x32xf32>
    %169 = arith.addf %167, %168 : vector<2x32xf32>
    %170 = arith.negf %169 : vector<2x32xf32>
    %171 = math.exp %170 : vector<2x32xf32>
    %cst_44 = arith.constant 1.000000e+00 : f32
    %172 = vector.broadcast %cst_44 : f32 to vector<2x32xf32>
    %173 = arith.addf %172, %171 : vector<2x32xf32>
    %174 = arith.divf %172, %173 : vector<2x32xf32>
    %175 = vector.extract_strided_slice %166 {offsets = [0, 32], sizes = [2, 32], strides = [1, 1]} : vector<2x96xf32> to vector<2x32xf32>
    %176 = vector.extract_strided_slice %165 {offsets = [0, 32], sizes = [2, 32], strides = [1, 1]} : vector<2x96xf32> to vector<2x32xf32>
    %177 = arith.addf %175, %176 : vector<2x32xf32>
    %178 = arith.negf %177 : vector<2x32xf32>
    %179 = math.exp %178 : vector<2x32xf32>
    %cst_45 = arith.constant 1.000000e+00 : f32
    %180 = vector.broadcast %cst_45 : f32 to vector<2x32xf32>
    %181 = arith.addf %180, %179 : vector<2x32xf32>
    %182 = arith.divf %180, %181 : vector<2x32xf32>
    %183 = vector.extract_strided_slice %166 {offsets = [0, 64], sizes = [2, 32], strides = [1, 1]} : vector<2x96xf32> to vector<2x32xf32>
    %184 = vector.extract_strided_slice %165 {offsets = [0, 64], sizes = [2, 32], strides = [1, 1]} : vector<2x96xf32> to vector<2x32xf32>
    %185 = arith.mulf %174, %184 : vector<2x32xf32>
    %186 = arith.addf %183, %185 : vector<2x32xf32>
    %187 = math.tanh %186 : vector<2x32xf32>
    %cst_46 = arith.constant 1.000000e+00 : f32
    %188 = vector.broadcast %cst_46 : f32 to vector<2x32xf32>
    %189 = arith.subf %188, %182 : vector<2x32xf32>
    %190 = arith.mulf %189, %187 : vector<2x32xf32>
    %191 = arith.mulf %182, %162 : vector<2x32xf32>
    %192 = arith.addf %190, %191 : vector<2x32xf32>
    %c8 = arith.constant 8 : index
    %c0_47 = arith.constant 0 : index
    %193 = vector.load %arg17[%c8, %c0_47] : memref<16x32xf32, #tpu.memory_space<vmem>>, vector<2x32xf32>
    tpu.vector_store %arg17[%c8, %c0_47], %192 {strides = array<i32>} : memref<16x32xf32, #tpu.memory_space<vmem>>, vector<2x32xf32>,
    %194 = vector.extract_strided_slice %20 {offsets = [10, 0], sizes = [2, 1], strides = [1, 1]} : vector<16x1xf32> to vector<2x1xf32>
    %195 = vector.broadcast %194 : vector<2x1xf32> to vector<2x32xf32>
    %196 = arith.mulf %192, %195 : vector<2x32xf32>
    %cst_48 = arith.constant dense<0.000000e+00> : vector<2x96xf32>
    %197 = tpu.matmul %196, %21, %cst_48 {dimension_numbers = #tpu.dot_dimension_numbers<[1], [0], [0], [1], [0, 0, 1, 1], [], []>} : vector<2x32xf32>, vector<32x96xf32>, vector<2x96xf32> -> vector<2x96xf32>
    %198 = vector.broadcast %22 : vector<1x96xf32> to vector<2x96xf32>
    %199 = arith.addf %197, %198 : vector<2x96xf32>
    %200 = vector.extract_strided_slice %19 {offsets = [10, 0], sizes = [2, 96], strides = [1, 1]} : vector<16x96xf32> to vector<2x96xf32>
    %201 = vector.extract_strided_slice %200 {offsets = [0, 0], sizes = [2, 32], strides = [1, 1]} : vector<2x96xf32> to vector<2x32xf32>
    %202 = vector.extract_strided_slice %199 {offsets = [0, 0], sizes = [2, 32], strides = [1, 1]} : vector<2x96xf32> to vector<2x32xf32>
    %203 = arith.addf %201, %202 : vector<2x32xf32>
    %204 = arith.negf %203 : vector<2x32xf32>
    %205 = math.exp %204 : vector<2x32xf32>
    %cst_49 = arith.constant 1.000000e+00 : f32
    %206 = vector.broadcast %cst_49 : f32 to vector<2x32xf32>
    %207 = arith.addf %206, %205 : vector<2x32xf32>
    %208 = arith.divf %206, %207 : vector<2x32xf32>
    %209 = vector.extract_strided_slice %200 {offsets = [0, 32], sizes = [2, 32], strides = [1, 1]} : vector<2x96xf32> to vector<2x32xf32>
    %210 = vector.extract_strided_slice %199 {offsets = [0, 32], sizes = [2, 32], strides = [1, 1]} : vector<2x96xf32> to vector<2x32xf32>
    %211 = arith.addf %209, %210 : vector<2x32xf32>
    %212 = arith.negf %211 : vector<2x32xf32>
    %213 = math.exp %212 : vector<2x32xf32>
    %cst_50 = arith.constant 1.000000e+00 : f32
    %214 = vector.broadcast %cst_50 : f32 to vector<2x32xf32>
    %215 = arith.addf %214, %213 : vector<2x32xf32>
    %216 = arith.divf %214, %215 : vector<2x32xf32>
    %217 = vector.extract_strided_slice %200 {offsets = [0, 64], sizes = [2, 32], strides = [1, 1]} : vector<2x96xf32> to vector<2x32xf32>
    %218 = vector.extract_strided_slice %199 {offsets = [0, 64], sizes = [2, 32], strides = [1, 1]} : vector<2x96xf32> to vector<2x32xf32>
    %219 = arith.mulf %208, %218 : vector<2x32xf32>
    %220 = arith.addf %217, %219 : vector<2x32xf32>
    %221 = math.tanh %220 : vector<2x32xf32>
    %cst_51 = arith.constant 1.000000e+00 : f32
    %222 = vector.broadcast %cst_51 : f32 to vector<2x32xf32>
    %223 = arith.subf %222, %216 : vector<2x32xf32>
    %224 = arith.mulf %223, %221 : vector<2x32xf32>
    %225 = arith.mulf %216, %196 : vector<2x32xf32>
    %226 = arith.addf %224, %225 : vector<2x32xf32>
    %c10 = arith.constant 10 : index
    %c0_52 = arith.constant 0 : index
    %227 = vector.load %arg17[%c10, %c0_52] : memref<16x32xf32, #tpu.memory_space<vmem>>, vector<2x32xf32>
    tpu.vector_store %arg17[%c10, %c0_52], %226 {strides = array<i32>} : memref<16x32xf32, #tpu.memory_space<vmem>>, vector<2x32xf32>,
    %228 = vector.extract_strided_slice %20 {offsets = [12, 0], sizes = [2, 1], strides = [1, 1]} : vector<16x1xf32> to vector<2x1xf32>
    %229 = vector.broadcast %228 : vector<2x1xf32> to vector<2x32xf32>
    %230 = arith.mulf %226, %229 : vector<2x32xf32>
    %cst_53 = arith.constant dense<0.000000e+00> : vector<2x96xf32>
    %231 = tpu.matmul %230, %21, %cst_53 {dimension_numbers = #tpu.dot_dimension_numbers<[1], [0], [0], [1], [0, 0, 1, 1], [], []>} : vector<2x32xf32>, vector<32x96xf32>, vector<2x96xf32> -> vector<2x96xf32>
    %232 = vector.broadcast %22 : vector<1x96xf32> to vector<2x96xf32>
    %233 = arith.addf %231, %232 : vector<2x96xf32>
    %234 = vector.extract_strided_slice %19 {offsets = [12, 0], sizes = [2, 96], strides = [1, 1]} : vector<16x96xf32> to vector<2x96xf32>
    %235 = vector.extract_strided_slice %234 {offsets = [0, 0], sizes = [2, 32], strides = [1, 1]} : vector<2x96xf32> to vector<2x32xf32>
    %236 = vector.extract_strided_slice %233 {offsets = [0, 0], sizes = [2, 32], strides = [1, 1]} : vector<2x96xf32> to vector<2x32xf32>
    %237 = arith.addf %235, %236 : vector<2x32xf32>
    %238 = arith.negf %237 : vector<2x32xf32>
    %239 = math.exp %238 : vector<2x32xf32>
    %cst_54 = arith.constant 1.000000e+00 : f32
    %240 = vector.broadcast %cst_54 : f32 to vector<2x32xf32>
    %241 = arith.addf %240, %239 : vector<2x32xf32>
    %242 = arith.divf %240, %241 : vector<2x32xf32>
    %243 = vector.extract_strided_slice %234 {offsets = [0, 32], sizes = [2, 32], strides = [1, 1]} : vector<2x96xf32> to vector<2x32xf32>
    %244 = vector.extract_strided_slice %233 {offsets = [0, 32], sizes = [2, 32], strides = [1, 1]} : vector<2x96xf32> to vector<2x32xf32>
    %245 = arith.addf %243, %244 : vector<2x32xf32>
    %246 = arith.negf %245 : vector<2x32xf32>
    %247 = math.exp %246 : vector<2x32xf32>
    %cst_55 = arith.constant 1.000000e+00 : f32
    %248 = vector.broadcast %cst_55 : f32 to vector<2x32xf32>
    %249 = arith.addf %248, %247 : vector<2x32xf32>
    %250 = arith.divf %248, %249 : vector<2x32xf32>
    %251 = vector.extract_strided_slice %234 {offsets = [0, 64], sizes = [2, 32], strides = [1, 1]} : vector<2x96xf32> to vector<2x32xf32>
    %252 = vector.extract_strided_slice %233 {offsets = [0, 64], sizes = [2, 32], strides = [1, 1]} : vector<2x96xf32> to vector<2x32xf32>
    %253 = arith.mulf %242, %252 : vector<2x32xf32>
    %254 = arith.addf %251, %253 : vector<2x32xf32>
    %255 = math.tanh %254 : vector<2x32xf32>
    %cst_56 = arith.constant 1.000000e+00 : f32
    %256 = vector.broadcast %cst_56 : f32 to vector<2x32xf32>
    %257 = arith.subf %256, %250 : vector<2x32xf32>
    %258 = arith.mulf %257, %255 : vector<2x32xf32>
    %259 = arith.mulf %250, %230 : vector<2x32xf32>
    %260 = arith.addf %258, %259 : vector<2x32xf32>
    %c12 = arith.constant 12 : index
    %c0_57 = arith.constant 0 : index
    %261 = vector.load %arg17[%c12, %c0_57] : memref<16x32xf32, #tpu.memory_space<vmem>>, vector<2x32xf32>
    tpu.vector_store %arg17[%c12, %c0_57], %260 {strides = array<i32>} : memref<16x32xf32, #tpu.memory_space<vmem>>, vector<2x32xf32>,
    %262 = vector.extract_strided_slice %20 {offsets = [14, 0], sizes = [2, 1], strides = [1, 1]} : vector<16x1xf32> to vector<2x1xf32>
    %263 = vector.broadcast %262 : vector<2x1xf32> to vector<2x32xf32>
    %264 = arith.mulf %260, %263 : vector<2x32xf32>
    %cst_58 = arith.constant dense<0.000000e+00> : vector<2x96xf32>
    %265 = tpu.matmul %264, %21, %cst_58 {dimension_numbers = #tpu.dot_dimension_numbers<[1], [0], [0], [1], [0, 0, 1, 1], [], []>} : vector<2x32xf32>, vector<32x96xf32>, vector<2x96xf32> -> vector<2x96xf32>
    %266 = vector.broadcast %22 : vector<1x96xf32> to vector<2x96xf32>
    %267 = arith.addf %265, %266 : vector<2x96xf32>
    %268 = vector.extract_strided_slice %19 {offsets = [14, 0], sizes = [2, 96], strides = [1, 1]} : vector<16x96xf32> to vector<2x96xf32>
    %269 = vector.extract_strided_slice %268 {offsets = [0, 0], sizes = [2, 32], strides = [1, 1]} : vector<2x96xf32> to vector<2x32xf32>
    %270 = vector.extract_strided_slice %267 {offsets = [0, 0], sizes = [2, 32], strides = [1, 1]} : vector<2x96xf32> to vector<2x32xf32>
    %271 = arith.addf %269, %270 : vector<2x32xf32>
    %272 = arith.negf %271 : vector<2x32xf32>
    %273 = math.exp %272 : vector<2x32xf32>
    %cst_59 = arith.constant 1.000000e+00 : f32
    %274 = vector.broadcast %cst_59 : f32 to vector<2x32xf32>
    %275 = arith.addf %274, %273 : vector<2x32xf32>
    %276 = arith.divf %274, %275 : vector<2x32xf32>
    %277 = vector.extract_strided_slice %268 {offsets = [0, 32], sizes = [2, 32], strides = [1, 1]} : vector<2x96xf32> to vector<2x32xf32>
    %278 = vector.extract_strided_slice %267 {offsets = [0, 32], sizes = [2, 32], strides = [1, 1]} : vector<2x96xf32> to vector<2x32xf32>
    %279 = arith.addf %277, %278 : vector<2x32xf32>
    %280 = arith.negf %279 : vector<2x32xf32>
    %281 = math.exp %280 : vector<2x32xf32>
    %cst_60 = arith.constant 1.000000e+00 : f32
    %282 = vector.broadcast %cst_60 : f32 to vector<2x32xf32>
    %283 = arith.addf %282, %281 : vector<2x32xf32>
    %284 = arith.divf %282, %283 : vector<2x32xf32>
    %285 = vector.extract_strided_slice %268 {offsets = [0, 64], sizes = [2, 32], strides = [1, 1]} : vector<2x96xf32> to vector<2x32xf32>
    %286 = vector.extract_strided_slice %267 {offsets = [0, 64], sizes = [2, 32], strides = [1, 1]} : vector<2x96xf32> to vector<2x32xf32>
    %287 = arith.mulf %276, %286 : vector<2x32xf32>
    %288 = arith.addf %285, %287 : vector<2x32xf32>
    %289 = math.tanh %288 : vector<2x32xf32>
    %cst_61 = arith.constant 1.000000e+00 : f32
    %290 = vector.broadcast %cst_61 : f32 to vector<2x32xf32>
    %291 = arith.subf %290, %284 : vector<2x32xf32>
    %292 = arith.mulf %291, %289 : vector<2x32xf32>
    %293 = arith.mulf %284, %264 : vector<2x32xf32>
    %294 = arith.addf %292, %293 : vector<2x32xf32>
    %c14 = arith.constant 14 : index
    %c0_62 = arith.constant 0 : index
    %295 = vector.load %arg17[%c14, %c0_62] : memref<16x32xf32, #tpu.memory_space<vmem>>, vector<2x32xf32>
    tpu.vector_store %arg17[%c14, %c0_62], %294 {strides = array<i32>} : memref<16x32xf32, #tpu.memory_space<vmem>>, vector<2x32xf32>,
    %c0_63 = arith.constant 0 : index
    %c0_64 = arith.constant 0 : index
    %296 = vector.load %arg16[%c0_63, %c0_64] : memref<2x32xf32, #tpu.memory_space<vmem>>, vector<2x32xf32>
    tpu.vector_store %arg16[%c0_63, %c0_64], %294 {strides = array<i32>} : memref<2x32xf32, #tpu.memory_space<vmem>>, vector<2x32xf32>,
    %c0_65 = arith.constant 0 : index
    %c0_66 = arith.constant 0 : index
    %297 = vector.load %arg17[%c0_65, %c0_66] : memref<16x32xf32, #tpu.memory_space<vmem>>, vector<16x32xf32>
    %c0_67 = arith.constant 0 : index
    %c0_68 = arith.constant 0 : index
    %298 = vector.load %arg11[%c0_67, %c0_68] : memref<32x32xf32, #tpu.memory_space<vmem>>, vector<32x32xf32>
    %cst_69 = arith.constant dense<0.000000e+00> : vector<16x32xf32>
    %299 = tpu.matmul %297, %298, %cst_69 {dimension_numbers = #tpu.dot_dimension_numbers<[1], [0], [0], [1], [0, 0, 1, 1], [], []>} : vector<16x32xf32>, vector<32x32xf32>, vector<16x32xf32> -> vector<16x32xf32>
    %c0_70 = arith.constant 0 : index
    %c0_71 = arith.constant 0 : index
    %300 = vector.load %arg12[%c0_70, %c0_71] : memref<1x32xf32, #tpu.memory_space<vmem>>, vector<1x32xf32>
    %301 = vector.broadcast %300 : vector<1x32xf32> to vector<16x32xf32>
    %302 = arith.addf %299, %301 : vector<16x32xf32>
    %cst_72 = arith.constant 0.000000e+00 : f32
    %303 = vector.broadcast %cst_72 : f32 to vector<16x32xf32>
    %304 = arith.maximumf %302, %303 : vector<16x32xf32>
    %c0_73 = arith.constant 0 : index
    %c0_74 = arith.constant 0 : index
    %305 = vector.load %arg13[%c0_73, %c0_74] : memref<32x32xf32, #tpu.memory_space<vmem>>, vector<32x32xf32>
    %cst_75 = arith.constant dense<0.000000e+00> : vector<16x32xf32>
    %306 = tpu.matmul %304, %305, %cst_75 {dimension_numbers = #tpu.dot_dimension_numbers<[1], [0], [0], [1], [0, 0, 1, 1], [], []>} : vector<16x32xf32>, vector<32x32xf32>, vector<16x32xf32> -> vector<16x32xf32>
    %c0_76 = arith.constant 0 : index
    %c0_77 = arith.constant 0 : index
    %307 = vector.load %arg14[%c0_76, %c0_77] : memref<1x32xf32, #tpu.memory_space<vmem>>, vector<1x32xf32>
    %308 = vector.broadcast %307 : vector<1x32xf32> to vector<16x32xf32>
    %309 = arith.addf %306, %308 : vector<16x32xf32>
    %c0_78 = arith.constant 0 : index
    %c0_79 = arith.constant 0 : index
    %310 = vector.load %arg15[%c0_78, %c0_79] : memref<16x32xf32, #tpu.memory_space<vmem>>, vector<16x32xf32>
    tpu.vector_store %arg15[%c0_78, %c0_79], %309 {strides = array<i32>} : memref<16x32xf32, #tpu.memory_space<vmem>>, vector<16x32xf32>,
    return
  }
  func.func @transform_0(%arg0: i32) -> (i32, i32) {
    %c0_i32 = arith.constant 0 : i32
    %c0_i32_0 = arith.constant 0 : i32
    %c0_i32_1 = arith.constant 0 : i32
    return %c0_i32, %c0_i32_0 : i32, i32
  }
  func.func @transform_1(%arg0: i32) -> (i32, i32) {
    %c0_i32 = arith.constant 0 : i32
    %c0_i32_0 = arith.constant 0 : i32
    %c0_i32_1 = arith.constant 0 : i32
    return %c0_i32, %c0_i32_0 : i32, i32
  }
  func.func @transform_2(%arg0: i32) -> (i32, i32) {
    %c0_i32 = arith.constant 0 : i32
    %c0_i32_0 = arith.constant 0 : i32
    %c0_i32_1 = arith.constant 0 : i32
    return %c0_i32, %c0_i32_0 : i32, i32
  }
  func.func @transform_3(%arg0: i32) -> (i32, i32) {
    %c0_i32 = arith.constant 0 : i32
    %c0_i32_0 = arith.constant 0 : i32
    %c0_i32_1 = arith.constant 0 : i32
    return %c0_i32, %c0_i32_0 : i32, i32
  }
  func.func @transform_4(%arg0: i32) -> (i32, i32) {
    %c0_i32 = arith.constant 0 : i32
    %c0_i32_0 = arith.constant 0 : i32
    %c0_i32_1 = arith.constant 0 : i32
    return %c0_i32, %c0_i32_0 : i32, i32
  }
  func.func @transform_5(%arg0: i32) -> (i32, i32) {
    %c0_i32 = arith.constant 0 : i32
    %c0_i32_0 = arith.constant 0 : i32
    %c0_i32_1 = arith.constant 0 : i32
    return %c0_i32, %c0_i32_0 : i32, i32
  }
  func.func @transform_6(%arg0: i32) -> (i32, i32) {
    %c0_i32 = arith.constant 0 : i32
    %c0_i32_0 = arith.constant 0 : i32
    %c0_i32_1 = arith.constant 0 : i32
    return %c0_i32, %c0_i32_0 : i32, i32
  }
  func.func @transform_7(%arg0: i32) -> (i32, i32) {
    %c0_i32 = arith.constant 0 : i32
    %c0_i32_0 = arith.constant 0 : i32
    %c0_i32_1 = arith.constant 0 : i32
    return %c0_i32, %c0_i32_0 : i32, i32
  }
  func.func @transform_8(%arg0: i32) -> (i32, i32) {
    %c0_i32 = arith.constant 0 : i32
    %c0_i32_0 = arith.constant 0 : i32
    %c0_i32_1 = arith.constant 0 : i32
    return %c0_i32, %c0_i32_0 : i32, i32
  }
  func.func @transform_9(%arg0: i32) -> (i32, i32) {
    %c0_i32 = arith.constant 0 : i32
    %c0_i32_0 = arith.constant 0 : i32
    %c0_i32_1 = arith.constant 0 : i32
    return %c0_i32, %c0_i32_0 : i32, i32
  }
  func.func @transform_10(%arg0: i32) -> (i32, i32) {
    %c0_i32 = arith.constant 0 : i32
    %c0_i32_0 = arith.constant 0 : i32
    %c0_i32_1 = arith.constant 0 : i32
    return %c0_i32, %c0_i32_0 : i32, i32
  }
  func.func @transform_11(%arg0: i32) -> (i32, i32) {
    %c0_i32 = arith.constant 0 : i32
    %c0_i32_0 = arith.constant 0 : i32
    %c0_i32_1 = arith.constant 0 : i32
    return %c0_i32, %c0_i32_0 : i32, i32
  }
  func.func @transform_12(%arg0: i32) -> (i32, i32) {
    %c0_i32 = arith.constant 0 : i32
    %c0_i32_0 = arith.constant 0 : i32
    %c0_i32_1 = arith.constant 0 : i32
    return %c0_i32, %c0_i32_0 : i32, i32
  }
  func.func @transform_13(%arg0: i32) -> (i32, i32) {
    %c0_i32 = arith.constant 0 : i32
    %c0_i32_0 = arith.constant 0 : i32
    %c0_i32_1 = arith.constant 0 : i32
    return %c0_i32, %c0_i32_0 : i32, i32
  }
  func.func @transform_14(%arg0: i32) -> (i32, i32) {
    %c0_i32 = arith.constant 0 : i32
    %c0_i32_0 = arith.constant 0 : i32
    %c0_i32_1 = arith.constant 0 : i32
    return %c0_i32, %c0_i32_0 : i32, i32
  }
  func.func @transform_15(%arg0: i32) -> (i32, i32) {
    %c0_i32 = arith.constant 0 : i32
    %c0_i32_0 = arith.constant 0 : i32
    %c0_i32_1 = arith.constant 0 : i32
    return %c0_i32, %c0_i32_0 : i32, i32
  }
}

</mosaic_0001>

<bundles_post_ra>
// kernel: squeeze.0
= control target key start
LH: loop header
LB: loop body
LE: loop exit
PB: predicated region body
PF: predicated region fallthrough
CT: control target
= control target key end

     0   :  { %vm3_vm0 = vcmask 7168   ;;  %s13_s9 = smov 127   ;;  %s33_s0 = inlined_call_operand.vmem [shape: s32[8,2,1], index: 0, kind: input, shape index: {}]   ;;  %s34_s1 = inlined_call_operand.vmem [shape: s32[16,1], index: 1, kind: output, shape index: {}]  }
   0x1   :  { %v2_v0 = vld [vmem:[%s33_s0] sm:$0xff]  }
   0x2   :  { %4 = vst.msk [vmem:[%s34_s1] ss:$2 sm:$0xff] %vm3_vm0, %v2_v0   ;;  %6 = vrot.lane.b32.xlu0 %v2_v0, %s13_s9 }
  0x74   :  { %v7_v1 = vpop.permute.xlu0 %6  }
  0x75   :  { %11 = vst.msk [vmem:[%s34_s1 + $0x1] ss:$2 sm:$0xff] %vm3_vm0, %v7_v1  }

// kernel: predictor_forward.1
= control target key start
LH: loop header
LB: loop body
LE: loop exit
PB: predicated region body
PF: predicated region fallthrough
CT: control target
= control target key end

     0   :  { %21 = vsyncpa [#allocation4], 0  ;;  %s2394_s0 = inlined_call_operand.vmem [shape: f32[16,32], index: 0, kind: input, shape index: {}]   ;;  %s2395_s1 = inlined_call_operand.vmem [shape: s32[16,1], index: 1, kind: input, shape index: {}]   ;;  %s2396_s2 = inlined_call_operand.vmem [shape: f32[16,1], index: 2, kind: input, shape index: {}]   ;;  %s2397_s3 = inlined_call_operand.vmem [shape: f32[32,128], index: 3, kind: input, shape index: {}]   ;;  %s2398_s4 = inlined_call_operand.vmem [shape: f32[4,128], index: 4, kind: input, shape index: {}]   ;;  %s2399_s5 = inlined_call_operand.vmem [shape: f32[1,128], index: 5, kind: input, shape index: {}]   ;;  %s2400_s6 = inlined_call_operand.vmem [shape: f32[128,96], index: 6, kind: input, shape index: {}]   ;;  %s2401_s7 = inlined_call_operand.vmem [shape: f32[1,96], index: 7, kind: input, shape index: {}]   ;;  %s2402_s8 = inlined_call_operand.vmem [shape: f32[32,96], index: 8, kind: input, shape index: {}]   ;;  %s2403_s9 = inlined_call_operand.vmem [shape: f32[1,96], index: 9, kind: input, shape index: {}]   ;;  %s2404_s10 = inlined_call_operand.vmem [shape: f32[32,32], index: 10, kind: input, shape index: {}]   ;;  %s2405_s11 = inlined_call_operand.vmem [shape: f32[1,32], index: 11, kind: input, shape index: {}]   ;;  %s2406_s12 = inlined_call_operand.vmem [shape: f32[32,32], index: 12, kind: input, shape index: {}]   ;;  %s2407_s13 = inlined_call_operand.vmem [shape: f32[1,32], index: 13, kind: input, shape index: {}]   ;;  %s2408_s14 = inlined_call_operand.hbm [shape: f32[16,32], index: 14, kind: output, shape index: {0}]   ;;  %s2409_s15 = inlined_call_operand.hbm [shape: f32[2,32], index: 15, kind: output, shape index: {1}]  }
   0x1   :  { %v51_v0 = vld [vmem:[%s2395_s1] sm:$0xff] }
   0x2   :  { %22 = vsyncpa [#allocation6], 0  ;;  %v1970_v1 = vmov 0   ;;  %v52_v2 = vld [vmem:[%s2395_s1 + $0x8] sm:$0xff]  ;;  %v73_v3 = vld [vmem:[%s2398_s4] sm:$0xf]  ;;  %v53_v29 = vlaneseq }
   0x3   :  { %1872 = vset.pattern.permute.xlu0 %v1970_v1  ;;  %1873 = vset.pattern.permute.xlu1 %v1970_v1  ;;  %vm81_vm0 = vcmask 1043456   ;;  %v69_v4 = vld [vmem:[%s2397_s3] sm:$0xff]  ;;  %v70_v5 = vld [vmem:[%s2397_s3 + $0x8] sm:$0xff]  ;;  %v253_v10 = vld [vmem:[%s2400_s6 + $0x10] sm:$0xff]  ;;  %vm74_vm1 = vcmask 31744   ;;  %v1971_v32 = vmov 0.0  }
   0x4   :  { %56 = vperm.xlu0 %1872, %v51_v0   ;;  %1595 = vmatprep.subr.msk.mxu0 %vm81_vm0, %v73_v3  ;;  %v1756_v6 = vpack.c.bf16 %v70_v5, %v69_v4  ;;  %v349_v7 = vld [vmem:[%s2396_s2] sm:$0xff]  ;;  %v252_v9 = vld [vmem:[%s2400_s6 + $0x8] sm:$0xff]  ;;  %v254_v12 = vld [vmem:[%s2400_s6 + $0x18] sm:$0xff]  ;;  %v54_v30 = vand.u32 127, %v53_v29  ;;  %vm160_vm4 = vcmask 261120   ;;  %v1972_v44 = vmov 0.0|0.0  }
   0x5   :  { %1596 = vmatpush3.msk.msra.mxu0 %vm81_vm0, %v73_v3  ;;  %358 = vperm.xlu1 %1873, %v349_v7   ;;  %v251_v8 = vld [vmem:[%s2400_s6] sm:$0xff]  ;;  %v1768_v13 = vpack.c.bf16 %v254_v12, %v253_v10  ;;  %v256_v15 = vld [vmem:[%s2400_s6 + $0x28] sm:$0xff]  ;;  %v257_v17 = vld [vmem:[%s2400_s6 + $0x30] sm:$0xff]  ;;  %vm1973_vm5 = vmmov 0   ;;  %vm471_vm6 = vcmask 254976   ;;  %vm698_vm7 = vcmask 259076  }
   0x6   :  { %1757 = vmatprep.subr.bf16.mxu0 %v1756_v6  ;;  %v1764_v11 = vpack.c.bf16 %v252_v9, %v251_v8  ;;  %v255_v14 = vld [vmem:[%s2400_s6 + $0x20] sm:$0xff]  ;;  %v258_v18 = vld [vmem:[%s2400_s6 + $0x38] sm:$0xff]  ;;  %v260_v21 = vld [vmem:[%s2400_s6 + $0x48] sm:$0xff]  ;;  %vm585_vm8 = vcmask 257026   ;;  %vm811_vm9 = vcmask 261126   ;;  %s1976_s26 = smov [#allocation5]  }
   0x7   :  { %v1772_v16 = vpack.c.bf16 %v256_v15, %v255_v14  ;;  %v1776_v19 = vpack.c.bf16 %v258_v18, %v257_v17  ;;  %v259_v20 = vld [vmem:[%s2400_s6 + $0x40] sm:$0xff]  ;;  %v261_v23 = vld [vmem:[%s2400_s6 + $0x50] sm:$0xff]  ;;  %v262_v24 = vld [vmem:[%s2400_s6 + $0x58] sm:$0xff]  ;;  %s1472_s27 = sshll.u32 %s1976_s26, 4  ;;  %s1473_s27 = int_to_ptr.vmem [resolvable:$true] %s1472_s27 }
   0x8   :  { %59 = vperm.xlu0 %1872, %v52_v2   ;;  %1765 = vmatprep.subr.bf16.mxu1 %v1764_v11  ;;  %v1780_v22 = vpack.c.bf16 %v260_v21, %v259_v20  ;;  %v1784_v25 = vpack.c.bf16 %v262_v24, %v261_v23  ;;  %v263_v26 = vld [vmem:[%s2400_s6 + $0x60] sm:$0xff]  ;;  %v264_v27 = vld [vmem:[%s2400_s6 + $0x68] sm:$0xff]  ;;  %v71_v34 = vld [vmem:[%s2397_s3 + $0x10] sm:$0xff]  ;;  %p1927_p1 = scmp.lt.s32.totalorder %s1473_s27, %s1473_s27 }
   0x9   :  { %1767 = vmatpush3.bf16.msra.mxu1 %v1764_v11  ;;  %v1788_v28 = vpack.c.bf16 %v264_v27, %v263_v26  ;;  %v72_v35 = vld [vmem:[%s2397_s3 + $0x18] sm:$0xff]  ;;  %v67_v38 = vld [vmem:[%s2394_s0] sm:$0xff]  ;;  %v352_v41 = vld [vmem:[%s2402_s8 + $0x8] sm:$0xff] }
   0xa   :  { %1769 = vmatprep.subr.bf16.mxu1 %v1768_v13  ;;  %v1760_v37 = vpack.c.bf16 %v72_v35, %v71_v34  ;;  %v351_v40 = vld [vmem:[%s2402_s8] sm:$0xff]  ;;  %v68_v42 = vld [vmem:[%s2394_s0 + $0x8] sm:$0xff]  ;;  %v353_v45 = vld [vmem:[%s2402_s8 + $0x10] sm:$0xff] }
   0xb   :  { %v2141_v43 = vpack.c.bf16 %v352_v41, %v351_v40  ;;  %v354_v46 = vld [vmem:[%s2402_s8 + $0x18] sm:$0xff]  ;;  %v265_v50 = vld [vmem:[%s2400_s6 + $0x70] sm:$0xff]  ;;  %v1491_v53 = vld [vmem:[%s2399_s5] ss:$0 sm:$0xff]  ;;  %s1974_s5 = smov 64  }
   0xc   :  { %v2154_v48 = vpack.c.bf16 %v354_v46, %v353_v45  ;;  %v266_v51 = vld [vmem:[%s2400_s6 + $0x78] sm:$0xff]  ;;  %v2182_v58 = vld [vmem:[%s2403_s9] ss:$0 sm:$0xff] }
   0xd   :  { %1771 = vmatpush3.bf16.msra.mxu1 %v1768_v13  ;;  %v1792_v52 = vpack.c.bf16 %v266_v51, %v265_v50  ;;  %v1492_v62 = vld [vmem:[%s2401_s7] ss:$0 sm:$0xff]  ;;  %s1975_s7 = smov 96  }
   0xe   :  { %1773 = vmatprep.subr.bf16.mxu1 %v1772_v16 }
  0x11   :  { %1775 = vmatpush3.bf16.msra.mxu1 %v1772_v16 }
  0x12   :  { %1777 = vmatprep.subr.bf16.mxu1 %v1776_v19 }
  0x15   :  { %1779 = vmatpush3.bf16.msra.mxu1 %v1776_v19 }
  0x16   :  { %1781 = vmatprep.subr.bf16.mxu1 %v1780_v22 }
  0x19   :  { %1783 = vmatpush3.bf16.msra.mxu1 %v1780_v22 }
  0x1a   :  { %1785 = vmatprep.subr.bf16.mxu1 %v1784_v25 }
  0x1d   :  { %1787 = vmatpush3.bf16.msra.mxu1 %v1784_v25 }
  0x1e   :  { %1789 = vmatprep.subr.bf16.mxu1 %v1788_v28 }
  0x21   :  { %1791 = vmatpush3.bf16.msra.mxu1 %v1788_v28 }
  0x22   :  { %1793 = vmatprep.subr.bf16.mxu1 %v1792_v52 }
  0x25   :  { %1795 = vmatpush3.bf16.msra.mxu1 %v1792_v52 }
  0x26   :  { %1814 = vmatprep.subr.bf16.mxu1 %v1972_v44 }
  0x83   :  { %v57_v31 = vpop.permute.xlu0 %56 }
  0x84   :  { %vm61_vm2 = vcmp.eq.s32.totalorder %v54_v30, %v57_v31  ;;  %v2152_v47 = vpop.permute.xlu1 %358 }
  0x85   :  { %v1484_v33 = vsel %vm61_vm2, 1.0, %v1971_v32  ;;  %v361_v49 = vmul.f32 0.0, %v2152_v47  ;;  %v2204_v17 = vrot.slane %v2152_v47, 2 }
  0x86   :  { %1597 = vmatprep.mubr.msk.f32.mxu0 %vm74_vm1, %v1484_v33 }
  0x87   :  { %v60_v36 = vpop.permute.xlu0 %59 }
  0x88   :  { %vm62_vm3 = vcmp.eq.s32.totalorder %v54_v30, %v60_v36 }
  0x89   :  { %v1485_v39 = vsel %vm62_vm3, 1.0, %v1971_v32 }
  0x8a   :  { %1598 = vmatmul.mubr.msk.f32.vlgmr.msra.gmra.mrb[0].mxu0 %vm74_vm1, %v1485_v39 }
  0x8b   :  { %1759 = vmatpush3.bf16.msra.mxu0 %v1756_v6  ;;  %1608 = vmatprep.mubr.msk.f32.mxu0 %vm160_vm4, %v67_v38 }
  0x8c   :  { %1761 = vmatprep.subr.bf16.mxu0 %v1760_v37 }
  0x8f   :  { %1763 = vmatpush3.bf16.msra.mxu0 %v1760_v37 }
  0x90   :  { %1796 = vmatprep.subr.bf16.mxu0 %v1972_v44 }
  0x92   :  { %1609 = vmatmul.mubr.msk.f32.vlgmr.msra.gmra.mrb[0].mxu0 %vm160_vm4, %v68_v42 }
  0x93   :  { %1798 = vmatpush3.bf16.msra.mxu0 %v2141_v43  ;;  %1654 = vmatprep.mubr.msk.f32.mxu0 %vm1973_vm5, %v1971_v32 }
  0x94   :  { %1799 = vmatprep.subr.bf16.mxu0 %v1972_v44 }
  0x97   :  { %1801 = vmatpush3.bf16.msra.mxu0 %v2154_v48 }
  0x98   :  { %1802 = vmatprep.subr.bf16.mxu0 %v1972_v44 }
  0x9a   :  { %1655 = vmatmul.mubr.msk.f32.vlgmr.msra.gmra.mrb[2].mxu0 %vm160_vm4, %v361_v49 }
  0x9b   :  { %1804 = vmatpush3.bf16.msra.mxu0 %v2141_v43  ;;  %1665 = vmatprep.mubr.msk.f32.mxu0 %vm1973_vm5, %v1971_v32 }
  0x9c   :  { %1805 = vmatprep.subr.bf16.mxu0 %v1972_v44 }
  0x9f   :  { %1807 = vmatpush3.bf16.msra.mxu0 %v2154_v48 }
  0xa0   :  { %1808 = vmatprep.subr.bf16.mxu0 %v1972_v44 }
 0x165   :  { %v1610_v54 = vpop.f32.mrb[0].mxu0 }
 0x166   :  { %v233_v55 = vpop.f32.mrb[1].mxu0  ;;  %v250_v57 = vadd.f32 %v1610_v54, %v1491_v53 }
 0x167   :  { %v249_v56 = vadd.f32 %v1491_v53, %v233_v55 }
 0x169   :  { %1643 = vmatprep.mubr.f32.mxu1 %v249_v56 }
 0x16a   :  { %1644 = vmatmul.mubr.f32.vlgmr.msra.gmra.mrb[0].mxu1 %v250_v57 }
 0x16b   :  { %1816 = vmatpush3.bf16.msra.mxu1 %v2141_v43  ;;  %1687 = vmatprep.mubr.msk.f32.mxu1 %vm1973_vm5, %v1971_v32 }
 0x16c   :  { %1817 = vmatprep.subr.bf16.mxu1 %v1972_v44 }
 0x16d   :  { %v437_v59 = vpop.f32.mrb[2].mxu0 }
 0x16e   :  { %v438_v60 = vadd.f32 %v2182_v58, %v437_v59  ;;  %v1656_v61 = vpop.f32.mrb[3].mxu0 }
 0x16f   :  { %1819 = vmatpush3.bf16.msra.mxu1 %v2154_v48 }
 0x170   :  { %449 = vrot.lane.b32.xlu1 %v438_v60, %s1974_s5  ;;  %1826 = vmatprep.subr.bf16.mxu1 %v1972_v44 }
 0x1e2   :  { %v450_v7 = vpop.permute.xlu1 %449 }
 0x23d   :  { %v1645_v63 = vpop.f32.mrb[0].mxu1 }
 0x23e   :  { %v2195_v0 = vadd.f32 %v1645_v63, %v1492_v62  ;;  %v340_v1 = vpop.f32.mrb[1].mxu1 }
 0x23f   :  { %v2197_v2 = vadd.f32 %v1492_v62, %v340_v1 }
 0x241   :  { %v441_v3 = vadd.f32 %v438_v60, %v2197_v2 }
 0x243   :  { %v1495_v4 = vmul.f32 -1.442695, %v441_v3 }
 0x245   :  { %1874 = vpow2.f32 %v1495_v4 }
 0x24f   :  { %v1875_v5 = vpop.eup %1874 }
 0x250   :  { %v445_v6 = vadd.f32 1.0, %v1875_v5 }
 0x252   :  { %1876 = vrcp.f32 %v445_v6 }
 0x25c   :  { %v1877_v8 = vpop.eup %1876 }
 0x25d   :  { %v452_v9 = vmul.f32 %v1877_v8, %v450_v7  ;;  %v459_v13 = vsub.f32 1.0, %v1877_v8  ;;  %v465_v15 = vmul.f32 %v1877_v8, %v361_v49 }
 0x25f   :  { %454 = vrot.lane.b32.xlu0 %v452_v9, %s1974_s5 }
 0x2d1   :  { %v455_v10 = vpop.permute.xlu0 %454 }
 0x2d2   :  { %v457_v11 = vadd.f32 %v455_v10, %v2197_v2 }
 0x2d4   :  { %1878 = vtanh.f32 %v457_v11 }
 0x2de   :  { %v1879_v12 = vpop.eup %1878 }
 0x2df   :  { %461 = vrot.lane.b32.xlu1 %v1879_v12, %s1975_s7 }
 0x351   :  { %v462_v14 = vpop.permute.xlu1 %461 }
 0x352   :  { %v464_v16 = vmul.f32 %v462_v14, %v459_v13  ;;  %v350_v14 = vld [vmem:[%s2396_s2 + $0x8] sm:$0xff] }
 0x354   :  { %v2206_v18 = vadd.f32 %v465_v15, %v464_v16 }
 0x356   :  { %v475_v19 = vmul.f32 %v2204_v17, %v2206_v18 }
 0x358   :  { %477 = vrot.lane.b32.xlu0 %v475_v19, %s1975_s7  ;;  %v577_v36 = vrot.slane %v475_v19, 6 }
 0x3ca   :  { %v478_v20 = vpop.permute.xlu0 %477 }
 0x3cb   :  { %1666 = vmatmul.mubr.msk.f32.vlgmr.msra.gmra.mrb[4].mxu0 %vm160_vm4, %v478_v20 }
 0x3cc   :  { %1810 = vmatpush3.bf16.msra.mxu0 %v2141_v43  ;;  %1676 = vmatprep.mubr.msk.f32.mxu0 %vm1973_vm5, %v1971_v32 }
 0x3cd   :  { %1811 = vmatprep.subr.bf16.mxu0 %v1972_v44 }
 0x3d0   :  { %1813 = vmatpush3.bf16.msra.mxu0 %v2154_v48 }
 0x3d1   :  { %1820 = vmatprep.subr.bf16.mxu0 %v1972_v44 }
 0x49e   :  { %v547_v21 = vpop.f32.mrb[4].mxu0 }
 0x49f   :  { %v548_v22 = vadd.f32 %v2182_v58, %v547_v21  ;;  %v1667_v23 = vpop.f32.mrb[5].mxu0 }
 0x4a1   :  { %v552_v24 = vrot.slane %v548_v22, 6 }
 0x4a3   :  { %561 = vrot.lane.b32.xlu1 %v552_v24, %s1974_s5  ;;  %v554_v25 = vadd.f32 %v552_v24, %v2197_v2 }
 0x4a5   :  { %v1497_v26 = vmul.f32 -1.442695, %v554_v25 }
 0x4a7   :  { %1880 = vpow2.f32 %v1497_v26 }
 0x4b1   :  { %v1881_v27 = vpop.eup %1880 }
 0x4b2   :  { %v558_v28 = vadd.f32 1.0, %v1881_v27 }
 0x4b4   :  { %1882 = vrcp.f32 %v558_v28 }
 0x4be   :  { %v1883_v29 = vpop.eup %1882 }
 0x4bf   :  { %v571_v37 = vsub.f32 1.0, %v1883_v29  ;;  %v579_v40 = vmul.f32 %v1883_v29, %v577_v36 }
 0x515   :  { %v562_v30 = vpop.permute.xlu1 %561 }
 0x516   :  { %v564_v31 = vmul.f32 %v1883_v29, %v562_v30 }
 0x518   :  { %566 = vrot.lane.b32.xlu0 %v564_v31, %s1974_s5 }
 0x58a   :  { %v567_v33 = vpop.permute.xlu0 %566 }
 0x58b   :  { %v569_v34 = vadd.f32 %v567_v33, %v2197_v2 }
 0x58d   :  { %1884 = vtanh.f32 %v569_v34 }
 0x597   :  { %v1885_v35 = vpop.eup %1884 }
 0x598   :  { %573 = vrot.lane.b32.xlu1 %v1885_v35, %s1975_s7 }
 0x60a   :  { %v574_v38 = vpop.permute.xlu1 %573 }
 0x60b   :  { %v576_v39 = vmul.f32 %v574_v38, %v571_v37 }
 0x60d   :  { %v2224_v41 = vadd.f32 %v579_v40, %v576_v39 }
 0x60f   :  { %v587_v42 = vmul.f32 %v2224_v41, %v2204_v17 }
 0x611   :  { %v589_v45 = vrot.slane %v587_v42, 2  ;;  %v690_v1 = vrot.slane %v587_v42, 6 }
 0x613   :  { %590 = vrot.lane.b32.xlu0 %v589_v45, %s1975_s7 }
 0x685   :  { %v591_v46 = vpop.permute.xlu0 %590 }
 0x686   :  { %1677 = vmatmul.mubr.msk.f32.vlgmr.msra.gmra.mrb[6].mxu0 %vm160_vm4, %v591_v46 }
 0x687   :  { %1822 = vmatpush3.bf16.msra.mxu0 %v2141_v43  ;;  %1698 = vmatprep.mubr.msk.f32.mxu0 %vm1973_vm5, %v1971_v32 }
 0x688   :  { %1823 = vmatprep.subr.bf16.mxu0 %v1972_v44 }
 0x68b   :  { %1825 = vmatpush3.bf16.msra.mxu0 %v2154_v48 }
 0x68c   :  { %1832 = vmatprep.subr.bf16.mxu0 %v1972_v44 }
 0x759   :  { %v660_v47 = vpop.f32.mrb[6].mxu0 }
 0x75a   :  { %v661_v49 = vadd.f32 %v2182_v58, %v660_v47  ;;  %v1678_v50 = vpop.f32.mrb[7].mxu0 }
 0x75c   :  { %v665_v51 = vrot.slane %v661_v49, 4 }
 0x75e   :  { %674 = vrot.lane.b32.xlu1 %v665_v51, %s1974_s5  ;;  %v667_v52 = vadd.f32 %v665_v51, %v2197_v2 }
 0x760   :  { %v1499_v53 = vmul.f32 -1.442695, %v667_v52 }
 0x762   :  { %1886 = vpow2.f32 %v1499_v53 }
 0x76c   :  { %v1887_v54 = vpop.eup %1886 }
 0x76d   :  { %v671_v55 = vadd.f32 1.0, %v1887_v54 }
 0x76f   :  { %1888 = vrcp.f32 %v671_v55 }
 0x779   :  { %v1889_v56 = vpop.eup %1888 }
 0x77a   :  { %v684_v63 = vsub.f32 1.0, %v1889_v56  ;;  %v692_v4 = vmul.f32 %v1889_v56, %v690_v1 }
 0x7d0   :  { %v675_v57 = vpop.permute.xlu1 %674 }
 0x7d1   :  { %v677_v59 = vmul.f32 %v1889_v56, %v675_v57 }
 0x7d3   :  { %679 = vrot.lane.b32.xlu0 %v677_v59, %s1974_s5 }
 0x845   :  { %v680_v60 = vpop.permute.xlu0 %679 }
 0x846   :  { %v682_v61 = vadd.f32 %v680_v60, %v2197_v2 }
 0x848   :  { %1890 = vtanh.f32 %v682_v61 }
 0x852   :  { %v1891_v62 = vpop.eup %1890 }
 0x853   :  { %686 = vrot.lane.b32.xlu1 %v1891_v62, %s1975_s7 }
 0x8c5   :  { %v687_v3 = vpop.permute.xlu1 %686 }
 0x8c6   :  { %v689_v5 = vmul.f32 %v687_v3, %v684_v63 }
 0x8c8   :  { %v2242_v6 = vadd.f32 %v692_v4, %v689_v5 }
 0x8ca   :  { %v700_v7 = vmul.f32 %v2242_v6, %v2204_v17 }
 0x8cc   :  { %v702_v8 = vrot.slane %v700_v7, 4  ;;  %v803_v27 = vrot.slane %v700_v7, 6 }
 0x8ce   :  { %703 = vrot.lane.b32.xlu0 %v702_v8, %s1975_s7 }
 0x940   :  { %v704_v9 = vpop.permute.xlu0 %703 }
 0x941   :  { %1688 = vmatmul.mubr.msk.f32.vlgmr.msra.gmra.mrb[2].mxu1 %vm160_vm4, %v704_v9 }
 0x942   :  { %1828 = vmatpush3.bf16.msra.mxu1 %v2141_v43  ;;  %1709 = vmatprep.mubr.msk.f32.mxu1 %vm1973_vm5, %v1971_v32 }
 0x943   :  { %1829 = vmatprep.subr.bf16.mxu1 %v1972_v44 }
 0x946   :  { %1831 = vmatpush3.bf16.msra.mxu1 %v2154_v48 }
 0x947   :  { %1838 = vmatprep.subr.bf16.mxu1 %v1972_v44 }
 0xa14   :  { %v773_v10 = vpop.f32.mrb[2].mxu1 }
 0xa15   :  { %v774_v11 = vadd.f32 %v2182_v58, %v773_v10  ;;  %v1689_v12 = vpop.f32.mrb[3].mxu1 }
 0xa17   :  { %v778_v13 = vrot.slane %v774_v11, 2 }
 0xa19   :  { %787 = vrot.lane.b32.xlu1 %v778_v13, %s1974_s5  ;;  %v780_v15 = vadd.f32 %v778_v13, %v2197_v2 }
 0xa1b   :  { %v1501_v16 = vmul.f32 -1.442695, %v780_v15 }
 0xa1d   :  { %815 = vperm.xlu1 %1873, %v350_v14   ;;  %1892 = vpow2.f32 %v1501_v16 }
 0xa27   :  { %v1893_v17 = vpop.eup %1892 }
 0xa28   :  { %v784_v19 = vadd.f32 1.0, %v1893_v17 }
 0xa2a   :  { %1894 = vrcp.f32 %v784_v19 }
 0xa34   :  { %v1895_v20 = vpop.eup %1894 }
 0xa35   :  { %v797_v26 = vsub.f32 1.0, %v1895_v20  ;;  %v805_v30 = vmul.f32 %v1895_v20, %v803_v27 }
 0xa8b   :  { %v788_v21 = vpop.permute.xlu1 %787 }
 0xa8c   :  { %v790_v22 = vmul.f32 %v1895_v20, %v788_v21 }
 0xa8e   :  { %792 = vrot.lane.b32.xlu0 %v790_v22, %s1974_s5 }
 0xa9c   :  { %v816_v28 = vpop.permute.xlu1 %815 }
 0xa9d   :  { %v2263_v33 = vrot.slane %v816_v28, 2 }
 0xb00   :  { %v793_v23 = vpop.permute.xlu0 %792 }
 0xb01   :  { %v795_v24 = vadd.f32 %v793_v23, %v2197_v2 }
 0xb03   :  { %1896 = vtanh.f32 %v795_v24 }
 0xb0d   :  { %v1897_v25 = vpop.eup %1896 }
 0xb0e   :  { %799 = vrot.lane.b32.xlu0 %v1897_v25, %s1975_s7 }
 0xb80   :  { %v800_v29 = vpop.permute.xlu0 %799 }
 0xb81   :  { %v802_v31 = vmul.f32 %v800_v29, %v797_v26 }
 0xb83   :  { %v2265_v34 = vadd.f32 %v805_v30, %v802_v31 }
 0xb85   :  { %v819_v35 = vmul.f32 %v2263_v33, %v2265_v34 }
 0xb87   :  { %v821_v36 = vrot.slane %v819_v35, 6 }
 0xb89   :  { %822 = vrot.lane.b32.xlu1 %v821_v36, %s1975_s7 }
 0xbfb   :  { %v823_v2 = vpop.permute.xlu1 %822 }
 0xbfc   :  { %1699 = vmatmul.mubr.msk.f32.vlgmr.msra.gmra.mrb[8].mxu0 %vm160_vm4, %v823_v2 }
 0xbfd   :  { %1834 = vmatpush3.bf16.msra.mxu0 %v2141_v43  ;;  %1720 = vmatprep.mubr.msk.f32.mxu0 %vm1973_vm5, %v1971_v32 }
 0xbfe   :  { %1835 = vmatprep.subr.bf16.mxu0 %v1972_v44 }
 0xc01   :  { %1837 = vmatpush3.bf16.msra.mxu0 %v2154_v48 }
 0xccf   :  { %v892_v37 = vpop.f32.mrb[8].mxu0 }
 0xcd0   :  { %v893_v38 = vadd.f32 %v2182_v58, %v892_v37  ;;  %v1700_v39 = vpop.f32.mrb[9].mxu0 }
 0xcd2   :  { %904 = vrot.lane.b32.xlu0 %v893_v38, %s1974_s5  ;;  %v896_v40 = vadd.f32 %v893_v38, %v2195_v0 }
 0xcd4   :  { %v1503_v42 = vmul.f32 -1.442695, %v896_v40 }
 0xcd6   :  { %1898 = vpow2.f32 %v1503_v42 }
 0xce0   :  { %v1899_v45 = vpop.eup %1898 }
 0xce1   :  { %v900_v46 = vadd.f32 1.0, %v1899_v45 }
 0xce3   :  { %1900 = vrcp.f32 %v900_v46 }
 0xced   :  { %v1901_v47 = vpop.eup %1900 }
 0xcee   :  { %v914_v54 = vsub.f32 1.0, %v1901_v47  ;;  %v921_v56 = vmul.f32 %v1901_v47, %v821_v36 }
 0xd44   :  { %v905_v49 = vpop.permute.xlu0 %904 }
 0xd45   :  { %v907_v50 = vmul.f32 %v1901_v47, %v905_v49 }
 0xd47   :  { %909 = vrot.lane.b32.xlu1 %v907_v50, %s1974_s5 }
 0xdb9   :  { %v910_v51 = vpop.permute.xlu1 %909 }
 0xdba   :  { %v912_v52 = vadd.f32 %v910_v51, %v2195_v0 }
 0xdbc   :  { %1902 = vtanh.f32 %v912_v52 }
 0xdc6   :  { %v1903_v53 = vpop.eup %1902 }
 0xdc7   :  { %916 = vrot.lane.b32.xlu0 %v1903_v53, %s1975_s7 }
 0xe39   :  { %v917_v55 = vpop.permute.xlu0 %916 }
 0xe3a   :  { %v919_v57 = vmul.f32 %v917_v55, %v914_v54 }
 0xe3c   :  { %v2282_v59 = vadd.f32 %v921_v56, %v919_v57 }
 0xe3e   :  { %v928_v60 = vmul.f32 %v2282_v59, %v2263_v33 }
 0xe40   :  { %930 = vrot.lane.b32.xlu1 %v928_v60, %s1975_s7  ;;  %v1030_v11 = vrot.slane %v928_v60, 6 }
 0xeb2   :  { %v931_v61 = vpop.permute.xlu1 %930 }
 0xeb3   :  { %1710 = vmatmul.mubr.msk.f32.vlgmr.msra.gmra.mrb[4].mxu1 %vm160_vm4, %v931_v61 }
 0xeb4   :  { %1840 = vmatpush3.bf16.msra.mxu1 %v2141_v43  ;;  %1731 = vmatprep.mubr.msk.f32.mxu1 %vm1973_vm5, %v1971_v32 }
 0xeb5   :  { %1841 = vmatprep.subr.bf16.mxu1 %v1972_v44 }
 0xeb8   :  { %1843 = vmatpush3.bf16.msra.mxu1 %v2154_v48 }
 0xf86   :  { %v1000_v62 = vpop.f32.mrb[4].mxu1 }
 0xf87   :  { %v1001_v63 = vadd.f32 %v2182_v58, %v1000_v62  ;;  %v1711_v1 = vpop.f32.mrb[5].mxu1 }
 0xf89   :  { %v1005_v3 = vrot.slane %v1001_v63, 6 }
 0xf8b   :  { %1014 = vrot.lane.b32.xlu0 %v1005_v3, %s1974_s5  ;;  %v1007_v4 = vadd.f32 %v1005_v3, %v2195_v0 }
 0xf8d   :  { %v1505_v5 = vmul.f32 -1.442695, %v1007_v4 }
 0xf8f   :  { %1904 = vpow2.f32 %v1505_v5 }
 0xf99   :  { %v1905_v7 = vpop.eup %1904 }
 0xf9a   :  { %v1011_v43 = vadd.f32 1.0, %v1905_v7 }
 0xf9c   :  { %1906 = vrcp.f32 %v1011_v43 }
 0xfa6   :  { %v1907_v8 = vpop.eup %1906 }
 0xfa7   :  { %v1024_v12 = vsub.f32 1.0, %v1907_v8  ;;  %v1032_v15 = vmul.f32 %v1907_v8, %v1030_v11 }
 0xffd   :  { %v1015_v32 = vpop.permute.xlu0 %1014 }
 0xffe   :  { %v1017_v9 = vmul.f32 %v1907_v8, %v1015_v32  ;;  %v1360_v32 = vld [vmem:[%s2406_s12] sm:$0xff] }
0x1000   :  { %1019 = vrot.lane.b32.xlu1 %v1017_v9, %s1974_s5  ;;  %v1361_v9 = vld [vmem:[%s2406_s12 + $0x8] sm:$0xff] }
0x1072   :  { %v1020_v44 = vpop.permute.xlu1 %1019 }
0x1073   :  { %v1022_v48 = vadd.f32 %v1020_v44, %v2195_v0 }
0x1075   :  { %1908 = vtanh.f32 %v1022_v48 }
0x107f   :  { %v1909_v10 = vpop.eup %1908 }
0x1080   :  { %1026 = vrot.lane.b32.xlu0 %v1909_v10, %s1975_s7  ;;  %v1852_v10 = vpack.c.bf16 %v1361_v9, %v1360_v32 }
0x1082   :  { %1853 = vmatprep.subr.bf16.mxu1 %v1852_v10 }
0x10f2   :  { %v1027_v13 = vpop.permute.xlu0 %1026 }
0x10f3   :  { %v1029_v14 = vmul.f32 %v1027_v13, %v1024_v12 }
0x10f5   :  { %v2299_v16 = vadd.f32 %v1032_v15, %v1029_v14 }
0x10f7   :  { %v1039_v17 = vmul.f32 %v2299_v16, %v2263_v33 }
0x10f9   :  { %v1041_v19 = vrot.slane %v1039_v17, 2  ;;  %v1142_v38 = vrot.slane %v1039_v17, 6 }
0x10fb   :  { %1042 = vrot.lane.b32.xlu1 %v1041_v19, %s1975_s7  ;;  %v1362_v19 = vld [vmem:[%s2406_s12 + $0x10] sm:$0xff] }
0x116d   :  { %v1043_v20 = vpop.permute.xlu1 %1042 }
0x116e   :  { %1721 = vmatmul.mubr.msk.f32.vlgmr.msra.gmra.mrb[10].mxu0 %vm160_vm4, %v1043_v20  ;;  %v1363_v20 = vld [vmem:[%s2406_s12 + $0x18] sm:$0xff]  ;;  %s1922_s12 = scalar_lea.vmem %s1473_s27, 32 }
0x116f   :  { %p1923_p0 = scmp.ne.s32.totalorder %s1473_s27, %s1922_s12  ;;  %p1928_p2 = scmp.lt.s32.totalorder %s1922_s12, %s1922_s12 }
0x1171   :  { %p1929_p3 = por %p1928_p2, %p1927_p1 }
0x1173   :  { %p1930_p4 = pnand %p1929_p3, %p1923_p0 }
0x1241   :  { %v1112_v21 = vpop.f32.mrb[10].mxu0 }
0x1242   :  { %v1113_v22 = vadd.f32 %v2182_v58, %v1112_v21  ;;  %v1722_v23 = vpop.f32.mrb[11].mxu0  ;;  %v1856_v21 = vpack.c.bf16 %v1363_v20, %v1362_v19 }
0x1244   :  { %v1117_v24 = vrot.slane %v1113_v22, 4  ;;  %v1510_v22 = vld [vmem:[%s2405_s11] ss:$0 sm:$0xff] }
0x1246   :  { %1126 = vrot.lane.b32.xlu0 %v1117_v24, %s1974_s5  ;;  %v1119_v25 = vadd.f32 %v1117_v24, %v2195_v0 }
0x1248   :  { %v1507_v26 = vmul.f32 -1.442695, %v1119_v25 }
0x124a   :  { %1910 = vpow2.f32 %v1507_v26 }
0x1254   :  { %v1911_v27 = vpop.eup %1910 }
0x1255   :  { %v1123_v28 = vadd.f32 1.0, %v1911_v27 }
0x1257   :  { %1912 = vrcp.f32 %v1123_v28 }
0x1261   :  { %v1913_v29 = vpop.eup %1912 }
0x1262   :  { %v1136_v37 = vsub.f32 1.0, %v1913_v29  ;;  %v1144_v40 = vmul.f32 %v1913_v29, %v1142_v38 }
0x12b8   :  { %v1127_v30 = vpop.permute.xlu0 %1126 }
0x12b9   :  { %v1129_v31 = vmul.f32 %v1913_v29, %v1127_v30 }
0x12bb   :  { %1131 = vrot.lane.b32.xlu1 %v1129_v31, %s1974_s5 }
0x132d   :  { %v1132_v35 = vpop.permute.xlu1 %1131 }
0x132e   :  { %v1134_v36 = vadd.f32 %v1132_v35, %v2195_v0 }
0x1330   :  { %1914 = vtanh.f32 %v1134_v36 }
0x133a   :  { %v1915_v2 = vpop.eup %1914 }
0x133b   :  { %1138 = vrot.lane.b32.xlu0 %v1915_v2, %s1975_s7 }
0x13ad   :  { %v1139_v39 = vpop.permute.xlu0 %1138 }
0x13ae   :  { %v1141_v42 = vmul.f32 %v1139_v39, %v1136_v37 }
0x13b0   :  { %v1145_v45 = vadd.f32 %v1144_v40, %v1141_v42 }
0x13b2   :  { %v1151_v46 = vmul.f32 %v1145_v45, %v2263_v33 }
0x13b4   :  { %v1153_v47 = vrot.slane %v1151_v46, 4  ;;  %v1254_v43 = vrot.slane %v1151_v46, 6 }
0x13b6   :  { %1154 = vrot.lane.b32.xlu1 %v1153_v47, %s1975_s7 }
0x1428   :  { %v1155_v49 = vpop.permute.xlu1 %1154 }
0x1429   :  { %1732 = vmatmul.mubr.msk.f32.vlgmr.msra.gmra.mrb[6].mxu1 %vm160_vm4, %v1155_v49 }
0x142a   :  { %1855 = vmatpush3.bf16.msra.mxu1 %v1852_v10 }
0x142b   :  { %1857 = vmatprep.subr.bf16.mxu1 %v1856_v21 }
0x142e   :  { %1859 = vmatpush3.bf16.msra.mxu1 %v1856_v21 }
0x14fc   :  { %v1224_v50 = vpop.f32.mrb[6].mxu1 }
0x14fd   :  { %v1225_v51 = vadd.f32 %v2182_v58, %v1224_v50  ;;  %v1733_v52 = vpop.f32.mrb[7].mxu1 }
0x14ff   :  { %v1229_v53 = vrot.slane %v1225_v51, 2 }
0x1501   :  { %1238 = vrot.lane.b32.xlu0 %v1229_v53, %s1974_s5  ;;  %v1231_v54 = vadd.f32 %v1229_v53, %v2195_v0 }
0x1503   :  { %v1509_v55 = vmul.f32 -1.442695, %v1231_v54 }
0x1505   :  { %1916 = vpow2.f32 %v1509_v55 }
0x150f   :  { %v1917_v56 = vpop.eup %1916 }
0x1510   :  { %v1235_v57 = vadd.f32 1.0, %v1917_v56 }
0x1512   :  { %1918 = vrcp.f32 %v1235_v57 }
0x151c   :  { %v1919_v33 = vpop.eup %1918 }
0x151d   :  { %v1248_v7 = vsub.f32 1.0, %v1919_v33  ;;  %v1256_v44 = vmul.f32 %v1919_v33, %v1254_v43 }
0x1573   :  { %v1239_v60 = vpop.permute.xlu0 %1238 }
0x1574   :  { %v1241_v61 = vmul.f32 %v1919_v33, %v1239_v60 }
0x1576   :  { %1243 = vrot.lane.b32.xlu1 %v1241_v61, %s1974_s5 }
0x157a   :  { %468 = vrot.lane.b32.xlu1 %v2206_v18, %s1975_s7 }
0x157e   :  { %695 = vrot.lane.b32.xlu1 %v2242_v6, %s1975_s7 }
0x1582   :  { %924 = vrot.lane.b32.xlu1 %v2282_v59, %s1975_s7  ;;  %v1267_v59 = vld [vmem:[%s2404_s10 + $0x8] sm:$0xff] }
0x1586   :  { %1147 = vrot.lane.b32.xlu1 %v1145_v45, %s1975_s7 }
0x15e8   :  { %v1244_v58 = vpop.permute.xlu1 %1243 }
0x15e9   :  { %v1246_v62 = vadd.f32 %v1244_v58, %v2195_v0  ;;  %v1266_v0 = vld [vmem:[%s2404_s10] sm:$0xff] }
0x15ea   :  { %v1844_v4 = vpack.c.bf16 %v1267_v59, %v1266_v0 }
0x15eb   :  { %1920 = vtanh.f32 %v1246_v62 }
0x15ec   :  { %v469_v63 = vpop.permute.xlu1 %468  ;;  %1845 = vmatprep.subr.bf16.mxu0 %v1844_v4 }
0x15ed   :  { %472 = vst.msk [vmem:[#allocation2] sm:$0x3] %vm471_vm6, %v469_v63  ;;  %1847 = vmatpush3.bf16.msra.mxu0 %v1844_v4 }
0x15f0   :  { %v696_v1 = vpop.permute.xlu1 %695 }
0x15f1   :  { %699 = vst.msk [vmem:[#allocation2] sm:$0x30] %vm698_vm7, %v696_v1 }
0x15f4   :  { %v925_v3 = vpop.permute.xlu1 %924 }
0x15f5   :  { %v1921_v18 = vpop.eup %1920  ;;  %927 = vst.msk [vmem:[#allocation2 + $0x8] sm:$0x3] %vm471_vm6, %v925_v3 }
0x15f6   :  { %1250 = vrot.lane.b32.xlu0 %v1921_v18, %s1975_s7 }
0x15f8   :  { %v1148_v6 = vpop.permute.xlu1 %1147 }
0x15f9   :  { %1150 = vst.msk [vmem:[#allocation2 + $0x8] sm:$0x30] %vm698_vm7, %v1148_v6 }
0x15fa   :  { %582 = vrot.lane.b32.xlu0 %v2224_v41, %s1975_s7  ;;  %v1268_v41 = vld [vmem:[%s2404_s10 + $0x10] sm:$0xff] }
0x15fe   :  { %808 = vrot.lane.b32.xlu0 %v2265_v34, %s1975_s7  ;;  %v1269_v34 = vld [vmem:[%s2404_s10 + $0x18] sm:$0xff] }
0x15ff   :  { %v1848_v5 = vpack.c.bf16 %v1269_v34, %v1268_v41 }
0x1601   :  { %1849 = vmatprep.subr.bf16.mxu0 %v1848_v5 }
0x1602   :  { %1035 = vrot.lane.b32.xlu0 %v2299_v16, %s1975_s7  ;;  %1851 = vmatpush3.bf16.msra.mxu0 %v1848_v5 }
0x1668   :  { %v1251_v8 = vpop.permute.xlu0 %1250 }
0x1669   :  { %v1253_v48 = vmul.f32 %v1251_v8, %v1248_v7 }
0x166b   :  { %v1257_v11 = vadd.f32 %v1256_v44, %v1253_v48 }
0x166c   :  { %v583_v12 = vpop.permute.xlu0 %582 }
0x166d   :  { %586 = vst.msk [vmem:[#allocation2] sm:$0xc] %vm585_vm8, %v583_v12  ;;  %1259 = vrot.lane.b32.xlu0 %v1257_v11, %s1975_s7 }
0x1670   :  { %v809_v13 = vpop.permute.xlu0 %808 }
0x1671   :  { %812 = vst.msk [vmem:[#allocation2] sm:$0xc0] %vm811_vm9, %v809_v13 }
0x1674   :  { %v1036_v14 = vpop.permute.xlu0 %1035 }
0x1675   :  { %1038 = vst.msk [vmem:[#allocation2 + $0x8] sm:$0xc] %vm585_vm8, %v1036_v14 }
0x1678   :  { %v1264_v15 = vld [vmem:[#allocation2] sm:$0xff] }
0x1679   :  { %1742 = vmatprep.mubr.msk.f32.mxu0 %vm160_vm4, %v1264_v15 }
0x16df   :  { %v1260_v16 = vpop.permute.xlu0 %1259 }
0x16e0   :  { %1262 = vst.msk [vmem:[#allocation2 + $0x8] sm:$0xc0] %vm811_vm9, %v1260_v16  ;;  %1263 = vst.msk [vmem:[#allocation5 - $0x6] sm:$0xc0] %vm811_vm9, %v1260_v16 }
0x16e7   :  { %v1265_v17 = vld [vmem:[#allocation2 + $0x8] sm:$0xff] }
0x16e8   :  { %1743 = vmatmul.mubr.msk.f32.vlgmr.msra.gmra.mrb[12].mxu0 %vm160_vm4, %v1265_v17 }
0x17bb   :  { %v1744_v23 = vpop.f32.mrb[12].mxu0 }
0x17bc   :  { %v1355_v24 = vadd.f32 %v1744_v23, %v1510_v22  ;;  %v1349_v25 = vpop.f32.mrb[13].mxu0 }
0x17bd   :  { %v1350_v26 = vadd.f32 %v1510_v22, %v1349_v25 }
0x17be   :  { %v1359_v28 = vmax.f32 %v1355_v24, 0.0 }
0x17bf   :  { %v1358_v27 = vmax.f32 %v1350_v26, 0.0 }
0x17c1   :  { %1753 = vmatprep.mubr.msk.f32.mxu1 %vm160_vm4, %v1358_v27 }
0x17c2   :  { %1754 = vmatmul.mubr.msk.f32.vlgmr.msra.gmra.mrb[8].mxu1 %vm160_vm4, %v1359_v28 }
0x17c3   :  { %1933 = shalt.err (!%p1930_p4)
}
0x17c4   :  { %s1934_s6 = scalar_lea.hbm %s2409_s15, 32 }
0x17c5   :  { %p1935_p5 = scmp.ne.s32.totalorder %s2409_s15, %s1934_s6  ;;  %p1938_p6 = scmp.lt.u32.totalorder %s1934_s6, %s2409_s15 }
0x17c7   :  { %p1940_p7 = pnand %p1938_p6, %p1935_p5 }
0x17c9   :  { %1943 = shalt.err (!%p1940_p7)
}
0x17ca   :  { %1475 = dma.vmem_to_hbm [thread:$0]  %s1473_s27, 32, %s2409_s15, [#allocation6]   ;;  %v1513_v29 = vld [vmem:[%s2407_s13] ss:$0 sm:$0xff] }
0x17cb   :  { %s1977_s30 = smov [#allocation3]  }
0x17cc   :  { %s1459_s16 = sshll.u32 %s1977_s30, 4  ;;  %s1460_s16 = int_to_ptr.vmem [resolvable:$true] %s1459_s16 }
0x17cd   :  { %s1944_s17 = scalar_lea.vmem %s1460_s16, 256  ;;  %p1949_p9 = scmp.lt.s32.totalorder %s1460_s16, %s1460_s16 }
0x17ce   :  { %p1945_p8 = scmp.ne.s32.totalorder %s1460_s16, %s1944_s17  ;;  %p1950_p10 = scmp.lt.s32.totalorder %s1944_s17, %s1944_s17 }
0x17d0   :  { %p1951_p11 = por %p1950_p10, %p1949_p9 }
0x17d2   :  { %p1952_p12 = pnand %p1951_p11, %p1945_p8 }
0x1895   :  { %v1755_v30 = vpop.f32.mrb[8].mxu1 }
0x1896   :  { %v1449_v31 = vadd.f32 %v1755_v30, %v1513_v29  ;;  %v1443_v35 = vpop.f32.mrb[9].mxu1 }
0x1897   :  { %v1444_v36 = vadd.f32 %v1513_v29, %v1443_v35 }
0x1898   :  { %1453 = vst.msk [vmem:[#allocation3 + $0x8] sm:$0xff] %vm160_vm4, %v1449_v31 }
0x1899   :  { %1452 = vst.msk [vmem:[#allocation3] sm:$0xff] %vm160_vm4, %v1444_v36 }
0x189a   :  { %1955 = shalt.err (!%p1952_p12)
}
0x189b   :  { %s1956_s18 = scalar_lea.hbm %s2408_s14, 256 }
0x189c   :  { %p1957_p13 = scmp.ne.s32.totalorder %s2408_s14, %s1956_s18  ;;  %p1960_p0 = scmp.lt.u32.totalorder %s1956_s18, %s2408_s14 }
0x189e   :  { %p1962_p1 = pnand %p1960_p0, %p1957_p13 }
0x18a0   :  { %1965 = shalt.err (!%p1962_p1)
}
0x18a1   :  { %s1978_s10 = smov 128   ;;  %s1979_s8 = smov 8  }
0x18a2   :  { %1465 = dma.vmem_to_hbm [thread:$0]  %s1460_s16, 256, %s2408_s14, [#allocation4], %s1978_s10, %s1978_s10, %s1979_s8  }
0x18a3   :  { %1966 = dma.done.wait [#allocation4], 256  }
0x18a4   :  { %1967 = vsyncadd [#allocation4], 4294967040 }
0x18a5   :  { %1968 = dma.done.wait [#allocation6], 32  }
0x18a6   :  { %1969 = vsyncadd [#allocation6], 4294967264 }
0x18a7   :  { %1482 = vsyncpa [#allocation4], 1 }
0x18a8   :  { %1483 = vsyncpa [#allocation6], 1 }

</bundles_post_ra>
